<compile_context>
chip_gen: v5e
topology: v5e:2x2
jax: 0.10.0
libtpu: 0.0.40
codegen_flags: <defaults>
</compile_context>

<pallas_src>
import functools
import math

import jax
import jax.numpy as jnp
from jax import lax
from jax.experimental import pallas as pl
from jax.experimental.pallas import tpu as pltpu

LANE = 128  # vreg lane width / MXU-friendly channel multiple


def _gelu(x):
    # TODO(synk): PyTorch nn.GELU() default is the exact erf GELU; kernel and reference both
    # use the tanh approximation (max abs diff ~1e-3 vs erf).
    c = math.sqrt(2.0 / math.pi)
    return 0.5 * x * (1.0 + jnp.tanh(c * (x + 0.044715 * x * x * x)))


def _round_up(v, m):
    return (v + m - 1) // m * m


def _pick_band(h):
    # Image rows per fc2 band (conv rows for the band, then one banded MXU matmul).
    for b in (8, 16, 4, 2):
        if h % b == 0:
            return b
    return h  # fallback: single band


def convffn_kernel(x_ref, w1_ref, b1_ref, wdw_ref, bdw_ref, w2_ref, b2_ref,
                   o_ref, pad_ref, band_ref, *, H, W, hidden, L, Wp, BAND, CH):
    """One image per grid step.

    pad_ref : (H+4, Wp, hidden) bf16 padded image (channels on lanes, 8-aligned interior).
    band_ref: (BAND*W, hidden) bf16 staging of (gelu(fc1) + gelu(dwconv)) for one row band;
              it is the bf16 fc2 LHS, so it never needs an f32 copy or a whole-array cast.
    """
    c0 = L - 2  # first padded-image column read by the 5x5 windows

    # ----- fc1 + GELU (MXU: bf16 x bf16, f32 accumulation) -----
    x = x_ref[0].astype(jnp.bfloat16)                                  # (N, Cin)
    h = jnp.dot(x, w1_ref[...], preferred_element_type=jnp.float32)
    h = _gelu(h + b1_ref[...])                                         # (N, hidden) f32

    # ----- zero only the padding border (interior is fully overwritten below) -----
    zrow = jnp.zeros((2, Wp, hidden), pad_ref.dtype)
    pad_ref[0:2, :, :] = zrow
    pad_ref[H + 2:H + 4, :, :] = zrow
    zcol = jnp.zeros((H, L, hidden), pad_ref.dtype)
    pad_ref[2:2 + H, 0:L, :] = zcol           # left pad  (8 cols, aligned)
    pad_ref[2:2 + H, L + W:Wp, :] = zcol      # right pad (8 cols, aligned)

    # ----- gelu(fc1) straight into the padded interior (no double staging) -----
    # reshape (H*W, hidden) -> (H, W, hidden) only splits the sublane dim (W % 8 == 0): free.
    pad_ref[2:2 + H, L:L + W, :] = h.reshape(H, W, hidden).astype(pad_ref.dtype)

    # ----- depthwise 5x5 conv (stride 1, pad 2) + GELU + residual, banded fc2 -----
    nb = H // BAND

    def band_body(bi, carry):
        base = bi * BAND                      # first image row of this band

        # Static channel-chunk loop: 5 bf16 row slices + f32 acc stay well under 64 vregs,
        # and no (W, hidden) tap broadcast is ever materialized.
        for cc in range(0, hidden, CH):

            def row_body(r, carry2):
                i = base + r                  # image row; padded rows i..i+4 feed it
                rows = [pad_ref[i + di, :, cc:cc + CH] for di in range(5)]   # (Wp, CH) bf16
                # 25-tap MAC: bf16 slice * (1, CH) f32 tap (implicit sublane broadcast),
                # f32 accumulation (valid on v5e too: no bf16 VALU required).
                acc = rows[0][c0:c0 + W, :] * wdw_ref[0:1, cc:cc + CH]
                for di in range(5):
                    for dj in range(5):
                        k = di * 5 + dj
                        if k == 0:
                            continue
                        acc = acc + (rows[di][c0 + dj:c0 + dj + W, :]
                                     * wdw_ref[k:k + 1, cc:cc + CH])
                y = _gelu(acc + bdw_ref[0:1, cc:cc + CH])                    # (W, CH) f32
                h_row = rows[2][L:L + W, :]           # gelu(fc1) row i, already in registers
                off = pl.multiple_of(r * W, 8)
                # residual (Dropout p=0.0 is identity); bf16 store -> bf16 fc2 LHS.
                band_ref[pl.ds(off, W), cc:cc + CH] = (h_row + y).astype(band_ref.dtype)
                return carry2

            lax.fori_loop(0, BAND, row_body, 0)

        # Banded fc2 (MXU, bf16 x bf16, f32 accumulation) -- issues on the vector-extended
        # slot and hides under the VALU-bound conv of the neighbouring bands.
        out = jnp.dot(band_ref[...], w2_ref[...], preferred_element_type=jnp.float32)
        obase = pl.multiple_of(base * W, 8)
        o_ref[0, pl.ds(obase, BAND * W), :] = (out + b2_ref[...]).astype(o_ref.dtype)
        return carry

    lax.fori_loop(0, nb, band_body, 0)


def conv_ffn(x, x_size, params):
    """Pallas ConvFFN forward.  x: (B, N, Cin), x_size = (H, W) with N == H*W."""
    B, N, Cin = x.shape
    H, W = x_size
    assert N == H * W
    # TODO(synk): kernel assumes W % 8 == 0 (sublane-aligned image rows); general W would
    # need masked interior stores.
    assert W % 8 == 0, "ConvFFN Pallas kernel requires W % 8 == 0"

    hidden = params["w1"].shape[1]
    Cout = params["w2"].shape[1]
    # Lane-dense channel padding (zero-padded weights): mathematically a no-op (gelu(0)=0,
    # zero taps, zero fc2 rows/cols), but keeps vregs / MXU tiles dense and output stores
    # unmasked.  Padded output columns are sliced off below.
    hidden_p = _round_up(hidden, LANE)
    Cout_p = _round_up(Cout, LANE)

    def pad_last(a, to):
        p = to - a.shape[-1]
        return a if p == 0 else jnp.pad(a, [(0, 0)] * (a.ndim - 1) + [(0, p)])

    w1 = pad_last(params["w1"], hidden_p).astype(jnp.bfloat16)           # (Cin, hid_p)
    b1 = pad_last(params["b1"], hidden_p).astype(jnp.float32)            # (1, hid_p)
    wdw = pad_last(params["wdw"], hidden_p).astype(jnp.float32)          # (25, hid_p)
    bdw = pad_last(params["bdw"], hidden_p).astype(jnp.float32)          # (1, hid_p)
    w2 = jnp.pad(params["w2"], [(0, hidden_p - hidden), (0, Cout_p - Cout)]
                 ).astype(jnp.bfloat16)                                  # (hid_p, Cout_p)
    b2 = pad_last(params["b2"], Cout_p).astype(jnp.float32)              # (1, Cout_p)

    L = 8                    # left-pad columns -> 8-aligned interior
    Wp = W + 2 * L           # padded row width (multiple of 8)
    BAND = _pick_band(H)     # image rows per fc2 band
    CH = min(hidden_p, LANE)  # conv channel-chunk width (hidden_p is a multiple of 128)

    # Explicit VMEM budget: bf16 scratches + double-buffered I/O blocks + weights + ~2 MiB
    # Mosaic internal scratch, capped at 80% of the generation's physical VMEM
    # (v5e/v6e: 128 MiB -> ~102 MiB cap; v7x: 64 MiB -> ~51 MiB cap).
    itemsize = jnp.dtype(x.dtype).itemsize
    scratch_bytes = ((H + 4) * Wp + BAND * W) * hidden_p * 2             # bf16 scratches
    io_bytes = 2 * N * Cin * itemsize + 2 * N * Cout_p * itemsize        # double-buffered
    w_bytes = 2 * (2 * (Cin * hidden_p + hidden_p * Cout_p)              # bf16 weights
                   + 4 * (27 * hidden_p + Cout_p))                       # f32 biases + taps
    needed = scratch_bytes + io_bytes + w_bytes + (2 << 20)
    try:
        cap = int(getattr(pltpu.get_tpu_info(), "vmem_capacity_bytes", 128 << 20))
    except Exception:
        cap = 128 << 20
    vmem_limit = int(min(max(needed + needed // 4, 16 << 20), (cap * 4) // 5))

    kernel = functools.partial(convffn_kernel, H=H, W=W, hidden=hidden_p, L=L, Wp=Wp,
                               BAND=BAND, CH=CH)
    # TODO(synk): grid=(B,) only fills both v7x TensorCores when B >= 2 (balanced when B is
    # even); for B == 1 a second parallel axis over row-bands (2-row conv halo) would be
    # needed to use both cores.
    out = pl.pallas_call(
        kernel,
        out_shape=jax.ShapeDtypeStruct((B, N, Cout_p), x.dtype),
        grid=(B,),
        in_specs=[
            pl.BlockSpec((1, N, Cin), lambda b: (b, 0, 0)),      # x, one image per step
            pl.BlockSpec((Cin, hidden_p), lambda b: (0, 0)),     # fc1 weight (bf16)
            pl.BlockSpec((1, hidden_p), lambda b: (0, 0)),       # fc1 bias
            pl.BlockSpec((25, hidden_p), lambda b: (0, 0)),      # dw-conv taps
            pl.BlockSpec((1, hidden_p), lambda b: (0, 0)),       # dw-conv bias
            pl.BlockSpec((hidden_p, Cout_p), lambda b: (0, 0)),  # fc2 weight (bf16)
            pl.BlockSpec((1, Cout_p), lambda b: (0, 0)),         # fc2 bias
        ],
        out_specs=pl.BlockSpec((1, N, Cout_p), lambda b: (b, 0, 0)),
        scratch_shapes=[
            pltpu.VMEM((H + 4, Wp, hidden_p), jnp.bfloat16),     # padded image (bf16)
            pltpu.VMEM((BAND * W, hidden_p), jnp.bfloat16),      # per-band fc2 LHS (bf16)
        ],
        compiler_params=pltpu.CompilerParams(
            dimension_semantics=("parallel",),                   # megacore-shard batch (v7x)
            vmem_limit_bytes=vmem_limit),
    )(x, w1, b1, wdw, bdw, w2, b2)
    return out[..., :Cout] if Cout_p != Cout else out


def conv_ffn_reference(x, x_size, params):
    """Pure-JAX f32 reference mirroring the PyTorch forward (tanh-GELU variant)."""
    H, W = x_size
    B, N, _ = x.shape
    h = _gelu(x @ params["w1"] + params["b1"])                     # (B, N, hid)
    hid = h.shape[-1]
    img = h.reshape(B, H, W, hid)                                  # NHWC
    rhs = params["wdw"].reshape(5, 5, 1, hid)                      # HWIO, depthwise
    conv = jax.lax.conv_general_dilated(
        img, rhs, window_strides=(1, 1), padding=((2, 2), (2, 2)),
        dimension_numbers=("NHWC", "HWIO", "NHWC"),
        feature_group_count=hid)
    conv = conv + params["bdw"].reshape(1, 1, 1, hid)
    y = _gelu(conv).reshape(B, N, hid)
    return (h + y) @ params["w2"] + params["b2"]


if __name__ == "__main__":
    B, H, W = 2, 16, 16
    N = H * W
    in_features, hidden_features, out_features = 16, 32, 16

    key = jax.random.PRNGKey(0)
    ks = jax.random.split(key, 7)
    x = jax.random.normal(ks[0], (B, N, in_features), jnp.float32)
    params = dict(
        w1=0.1 * jax.random.normal(ks[1], (in_features, hidden_features), jnp.float32),
        b1=0.1 * jax.random.normal(ks[2], (1, hidden_features), jnp.float32),
        wdw=0.1 * jax.random.normal(ks[3], (25, hidden_features), jnp.float32),
        bdw=0.1 * jax.random.normal(ks[4], (1, hidden_features), jnp.float32),
        w2=0.1 * jax.random.normal(ks[5], (hidden_features, out_features), jnp.float32),
        b2=0.1 * jax.random.normal(ks[6], (1, out_features), jnp.float32),
    )

    out = conv_ffn(x, (H, W), params)
    out = jax.block_until_ready(out)

    ref = conv_ffn_reference(x, (H, W), params)
    max_err = float(jnp.max(jnp.abs(out - ref)))
    assert out.shape == (B, N, out_features), out.shape
    # bf16 MXU operands + bf16 staging scratches (f32 accumulation) vs f32 reference.
    assert max_err < 4e-2, f"max abs err {max_err}"
    print("KERNEL_OK")
</pallas_src>

<mosaic_0001>
module attributes {stable_mosaic.version = 11 : i64} {
  func.func @convffn_kernel(%arg0: i32, %arg1: memref<1x256x16xf32, #tpu.memory_space<vmem>>, %arg2: memref<16x128xbf16, #tpu.memory_space<vmem>>, %arg3: memref<1x128xf32, #tpu.memory_space<vmem>>, %arg4: memref<25x128xf32, #tpu.memory_space<vmem>>, %arg5: memref<1x128xf32, #tpu.memory_space<vmem>>, %arg6: memref<128x128xbf16, #tpu.memory_space<vmem>>, %arg7: memref<1x128xf32, #tpu.memory_space<vmem>>, %arg8: memref<1x256x128xf32, #tpu.memory_space<vmem>>, %arg9: memref<20x32x128xbf16, #tpu.memory_space<vmem>>, %arg10: memref<128x128xbf16, #tpu.memory_space<vmem>>) attributes {dimension_semantics = [#tpu.dimension_semantics<parallel>], iteration_bounds = array<i64: 2>, scalar_prefetch = 0 : i64, scratch_operands = 2 : i64, tpu.core_type = #tpu.core_type<tc>, window_params = [{transform_indices = @transform_0, window_bounds = array<i64: 1, 256, 16>}, {pipeline_mode = #tpu.pipeline_mode<synchronous>, transform_indices = @transform_1, window_bounds = array<i64: 16, 128>}, {pipeline_mode = #tpu.pipeline_mode<synchronous>, transform_indices = @transform_2, window_bounds = array<i64: 1, 128>}, {pipeline_mode = #tpu.pipeline_mode<synchronous>, transform_indices = @transform_3, window_bounds = array<i64: 25, 128>}, {pipeline_mode = #tpu.pipeline_mode<synchronous>, transform_indices = @transform_4, window_bounds = array<i64: 1, 128>}, {pipeline_mode = #tpu.pipeline_mode<synchronous>, transform_indices = @transform_5, window_bounds = array<i64: 128, 128>}, {pipeline_mode = #tpu.pipeline_mode<synchronous>, transform_indices = @transform_6, window_bounds = array<i64: 1, 128>}, {transform_indices = @transform_7, window_bounds = array<i64: 1, 256, 128>}]} {
    %c0 = arith.constant 0 : index
    %c0_0 = arith.constant 0 : index
    %c0_1 = arith.constant 0 : index
    %0 = vector.load %arg1[%c0, %c0_0, %c0_1] : memref<1x256x16xf32, #tpu.memory_space<vmem>>, vector<1x256x16xf32>
    %1 = vector.shape_cast %0 : vector<1x256x16xf32> to vector<256x16xf32>
    %2 = arith.truncf %1 : vector<256x16xf32> to vector<256x16xbf16>
    %c0_2 = arith.constant 0 : index
    %c0_3 = arith.constant 0 : index
    %3 = vector.load %arg2[%c0_2, %c0_3] : memref<16x128xbf16, #tpu.memory_space<vmem>>, vector<16x128xbf16>
    %cst = arith.constant dense<0.000000e+00> : vector<256x128xf32>
    %4 = tpu.matmul %2, %3, %cst {dimension_numbers = #tpu.dot_dimension_numbers<[1], [0], [0], [1], [0, 0, 1, 1], [], []>} : vector<256x16xbf16>, vector<16x128xbf16>, vector<256x128xf32> -> vector<256x128xf32>
    %c0_4 = arith.constant 0 : index
    %c0_5 = arith.constant 0 : index
    %5 = vector.load %arg3[%c0_4, %c0_5] : memref<1x128xf32, #tpu.memory_space<vmem>>, vector<1x128xf32>
    %6 = vector.broadcast %5 : vector<1x128xf32> to vector<256x128xf32>
    %7 = arith.addf %4, %6 : vector<256x128xf32>
    %cst_6 = arith.constant 5.000000e-01 : f32
    %8 = vector.broadcast %cst_6 : f32 to vector<256x128xf32>
    %9 = arith.mulf %8, %7 : vector<256x128xf32>
    %cst_7 = arith.constant 4.471500e-02 : f32
    %10 = vector.broadcast %cst_7 : f32 to vector<256x128xf32>
    %11 = arith.mulf %10, %7 : vector<256x128xf32>
    %12 = arith.mulf %11, %7 : vector<256x128xf32>
    %13 = arith.mulf %12, %7 : vector<256x128xf32>
    %14 = arith.addf %7, %13 : vector<256x128xf32>
    %cst_8 = arith.constant 0.797884583 : f32
    %15 = vector.broadcast %cst_8 : f32 to vector<256x128xf32>
    %16 = arith.mulf %15, %14 : vector<256x128xf32>
    %17 = math.tanh %16 : vector<256x128xf32>
    %cst_9 = arith.constant 1.000000e+00 : f32
    %18 = vector.broadcast %cst_9 : f32 to vector<256x128xf32>
    %19 = arith.addf %18, %17 : vector<256x128xf32>
    %20 = arith.mulf %9, %19 : vector<256x128xf32>
    %cst_10 = arith.constant 0.000000e+00 : bf16
    %21 = vector.broadcast %cst_10 : bf16 to vector<2x32x128xbf16>
    %c0_11 = arith.constant 0 : index
    %c0_12 = arith.constant 0 : index
    %c0_13 = arith.constant 0 : index
    %22 = vector.load %arg9[%c0_11, %c0_12, %c0_13] : memref<20x32x128xbf16, #tpu.memory_space<vmem>>, vector<2x32x128xbf16>
    tpu.vector_store %arg9[%c0_11, %c0_12, %c0_13], %21 {strides = array<i32>} : memref<20x32x128xbf16, #tpu.memory_space<vmem>>, vector<2x32x128xbf16>,
    %c18 = arith.constant 18 : index
    %c0_14 = arith.constant 0 : index
    %c0_15 = arith.constant 0 : index
    %23 = vector.load %arg9[%c18, %c0_14, %c0_15] : memref<20x32x128xbf16, #tpu.memory_space<vmem>>, vector<2x32x128xbf16>
    tpu.vector_store %arg9[%c18, %c0_14, %c0_15], %21 {strides = array<i32>} : memref<20x32x128xbf16, #tpu.memory_space<vmem>>, vector<2x32x128xbf16>,
    %cst_16 = arith.constant 0.000000e+00 : bf16
    %24 = vector.broadcast %cst_16 : bf16 to vector<16x8x128xbf16>
    %c2 = arith.constant 2 : index
    %c0_17 = arith.constant 0 : index
    %c0_18 = arith.constant 0 : index
    %25 = vector.load %arg9[%c2, %c0_17, %c0_18] : memref<20x32x128xbf16, #tpu.memory_space<vmem>>, vector<16x8x128xbf16>
    tpu.vector_store %arg9[%c2, %c0_17, %c0_18], %24 {strides = array<i32>} : memref<20x32x128xbf16, #tpu.memory_space<vmem>>, vector<16x8x128xbf16>,
    %c2_19 = arith.constant 2 : index
    %c24 = arith.constant 24 : index
    %c0_20 = arith.constant 0 : index
    %26 = vector.load %arg9[%c2_19, %c24, %c0_20] : memref<20x32x128xbf16, #tpu.memory_space<vmem>>, vector<16x8x128xbf16>
    tpu.vector_store %arg9[%c2_19, %c24, %c0_20], %24 {strides = array<i32>} : memref<20x32x128xbf16, #tpu.memory_space<vmem>>, vector<16x8x128xbf16>,
    %27 = vector.shape_cast %20 : vector<256x128xf32> to vector<16x16x128xf32>
    %28 = arith.truncf %27 : vector<16x16x128xf32> to vector<16x16x128xbf16>
    %c2_21 = arith.constant 2 : index
    %c8 = arith.constant 8 : index
    %c0_22 = arith.constant 0 : index
    %29 = vector.load %arg9[%c2_21, %c8, %c0_22] : memref<20x32x128xbf16, #tpu.memory_space<vmem>>, vector<16x16x128xbf16>
    tpu.vector_store %arg9[%c2_21, %c8, %c0_22], %28 {strides = array<i32>} : memref<20x32x128xbf16, #tpu.memory_space<vmem>>, vector<16x16x128xbf16>,
    %c0_i32 = arith.constant 0 : i32
    %c2_i32 = arith.constant 2 : i32
    %30 = arith.addi %c0_i32, %c2_i32 : i32
    %c1_i32 = arith.constant 1 : i32
    scf.for %arg11 = %c0_i32 to %30 step %c1_i32  : i32 {
      %c8_i32 = arith.constant 8 : i32
      %31 = arith.muli %arg11, %c8_i32 : i32
      %c0_i32_24 = arith.constant 0 : i32
      %c8_i32_25 = arith.constant 8 : i32
      %32 = arith.addi %c0_i32_24, %c8_i32_25 : i32
      %c1_i32_26 = arith.constant 1 : i32
      scf.for %arg12 = %c0_i32_24 to %32 step %c1_i32_26  : i32 {
        %45 = arith.addi %31, %arg12 : i32
        %c0_i32_37 = arith.constant 0 : i32
        %46 = arith.addi %45, %c0_i32_37 : i32
        %47 = arith.index_cast %46 : i32 to index
        %c0_38 = arith.constant 0 : index
        %c0_39 = arith.constant 0 : index
        %48 = vector.load %arg9[%47, %c0_38, %c0_39] : memref<20x32x128xbf16, #tpu.memory_space<vmem>>, vector<1x32x128xbf16>
        %49 = vector.shape_cast %48 : vector<1x32x128xbf16> to vector<32x128xbf16>
        %c1_i32_40 = arith.constant 1 : i32
        %50 = arith.addi %45, %c1_i32_40 : i32
        %51 = arith.index_cast %50 : i32 to index
        %c0_41 = arith.constant 0 : index
        %c0_42 = arith.constant 0 : index
        %52 = vector.load %arg9[%51, %c0_41, %c0_42] : memref<20x32x128xbf16, #tpu.memory_space<vmem>>, vector<1x32x128xbf16>
        %53 = vector.shape_cast %52 : vector<1x32x128xbf16> to vector<32x128xbf16>
        %c2_i32_43 = arith.constant 2 : i32
        %54 = arith.addi %45, %c2_i32_43 : i32
        %55 = arith.index_cast %54 : i32 to index
        %c0_44 = arith.constant 0 : index
        %c0_45 = arith.constant 0 : index
        %56 = vector.load %arg9[%55, %c0_44, %c0_45] : memref<20x32x128xbf16, #tpu.memory_space<vmem>>, vector<1x32x128xbf16>
        %57 = vector.shape_cast %56 : vector<1x32x128xbf16> to vector<32x128xbf16>
        %c3_i32 = arith.constant 3 : i32
        %58 = arith.addi %45, %c3_i32 : i32
        %59 = arith.index_cast %58 : i32 to index
        %c0_46 = arith.constant 0 : index
        %c0_47 = arith.constant 0 : index
        %60 = vector.load %arg9[%59, %c0_46, %c0_47] : memref<20x32x128xbf16, #tpu.memory_space<vmem>>, vector<1x32x128xbf16>
        %61 = vector.shape_cast %60 : vector<1x32x128xbf16> to vector<32x128xbf16>
        %c4_i32 = arith.constant 4 : i32
        %62 = arith.addi %45, %c4_i32 : i32
        %63 = arith.index_cast %62 : i32 to index
        %c0_48 = arith.constant 0 : index
        %c0_49 = arith.constant 0 : index
        %64 = vector.load %arg9[%63, %c0_48, %c0_49] : memref<20x32x128xbf16, #tpu.memory_space<vmem>>, vector<1x32x128xbf16>
        %65 = vector.shape_cast %64 : vector<1x32x128xbf16> to vector<32x128xbf16>
        %66 = vector.extract_strided_slice %49 {offsets = [6, 0], sizes = [16, 128], strides = [1, 1]} : vector<32x128xbf16> to vector<16x128xbf16>
        %c0_50 = arith.constant 0 : index
        %c0_51 = arith.constant 0 : index
        %67 = vector.load %arg4[%c0_50, %c0_51] : memref<25x128xf32, #tpu.memory_space<vmem>>, vector<1x128xf32>
        %68 = arith.extf %66 : vector<16x128xbf16> to vector<16x128xf32>
        %69 = vector.broadcast %67 : vector<1x128xf32> to vector<16x128xf32>
        %70 = arith.mulf %68, %69 : vector<16x128xf32>
        %71 = vector.extract_strided_slice %49 {offsets = [7, 0], sizes = [16, 128], strides = [1, 1]} : vector<32x128xbf16> to vector<16x128xbf16>
        %c1 = arith.constant 1 : index
        %c0_52 = arith.constant 0 : index
        %72 = vector.load %arg4[%c1, %c0_52] : memref<25x128xf32, #tpu.memory_space<vmem>>, vector<1x128xf32>
        %73 = arith.extf %71 : vector<16x128xbf16> to vector<16x128xf32>
        %74 = vector.broadcast %72 : vector<1x128xf32> to vector<16x128xf32>
        %75 = arith.mulf %73, %74 : vector<16x128xf32>
        %76 = arith.addf %70, %75 : vector<16x128xf32>
        %77 = vector.extract_strided_slice %49 {offsets = [8, 0], sizes = [16, 128], strides = [1, 1]} : vector<32x128xbf16> to vector<16x128xbf16>
        %c2_53 = arith.constant 2 : index
        %c0_54 = arith.constant 0 : index
        %78 = vector.load %arg4[%c2_53, %c0_54] : memref<25x128xf32, #tpu.memory_space<vmem>>, vector<1x128xf32>
        %79 = arith.extf %77 : vector<16x128xbf16> to vector<16x128xf32>
        %80 = vector.broadcast %78 : vector<1x128xf32> to vector<16x128xf32>
        %81 = arith.mulf %79, %80 : vector<16x128xf32>
        %82 = arith.addf %76, %81 : vector<16x128xf32>
        %83 = vector.extract_strided_slice %49 {offsets = [9, 0], sizes = [16, 128], strides = [1, 1]} : vector<32x128xbf16> to vector<16x128xbf16>
        %c3 = arith.constant 3 : index
        %c0_55 = arith.constant 0 : index
        %84 = vector.load %arg4[%c3, %c0_55] : memref<25x128xf32, #tpu.memory_space<vmem>>, vector<1x128xf32>
        %85 = arith.extf %83 : vector<16x128xbf16> to vector<16x128xf32>
        %86 = vector.broadcast %84 : vector<1x128xf32> to vector<16x128xf32>
        %87 = arith.mulf %85, %86 : vector<16x128xf32>
        %88 = arith.addf %82, %87 : vector<16x128xf32>
        %89 = vector.extract_strided_slice %49 {offsets = [10, 0], sizes = [16, 128], strides = [1, 1]} : vector<32x128xbf16> to vector<16x128xbf16>
        %c4 = arith.constant 4 : index
        %c0_56 = arith.constant 0 : index
        %90 = vector.load %arg4[%c4, %c0_56] : memref<25x128xf32, #tpu.memory_space<vmem>>, vector<1x128xf32>
        %91 = arith.extf %89 : vector<16x128xbf16> to vector<16x128xf32>
        %92 = vector.broadcast %90 : vector<1x128xf32> to vector<16x128xf32>
        %93 = arith.mulf %91, %92 : vector<16x128xf32>
        %94 = arith.addf %88, %93 : vector<16x128xf32>
        %95 = vector.extract_strided_slice %53 {offsets = [6, 0], sizes = [16, 128], strides = [1, 1]} : vector<32x128xbf16> to vector<16x128xbf16>
        %c5 = arith.constant 5 : index
        %c0_57 = arith.constant 0 : index
        %96 = vector.load %arg4[%c5, %c0_57] : memref<25x128xf32, #tpu.memory_space<vmem>>, vector<1x128xf32>
        %97 = arith.extf %95 : vector<16x128xbf16> to vector<16x128xf32>
        %98 = vector.broadcast %96 : vector<1x128xf32> to vector<16x128xf32>
        %99 = arith.mulf %97, %98 : vector<16x128xf32>
        %100 = arith.addf %94, %99 : vector<16x128xf32>
        %101 = vector.extract_strided_slice %53 {offsets = [7, 0], sizes = [16, 128], strides = [1, 1]} : vector<32x128xbf16> to vector<16x128xbf16>
        %c6 = arith.constant 6 : index
        %c0_58 = arith.constant 0 : index
        %102 = vector.load %arg4[%c6, %c0_58] : memref<25x128xf32, #tpu.memory_space<vmem>>, vector<1x128xf32>
        %103 = arith.extf %101 : vector<16x128xbf16> to vector<16x128xf32>
        %104 = vector.broadcast %102 : vector<1x128xf32> to vector<16x128xf32>
        %105 = arith.mulf %103, %104 : vector<16x128xf32>
        %106 = arith.addf %100, %105 : vector<16x128xf32>
        %107 = vector.extract_strided_slice %53 {offsets = [8, 0], sizes = [16, 128], strides = [1, 1]} : vector<32x128xbf16> to vector<16x128xbf16>
        %c7 = arith.constant 7 : index
        %c0_59 = arith.constant 0 : index
        %108 = vector.load %arg4[%c7, %c0_59] : memref<25x128xf32, #tpu.memory_space<vmem>>, vector<1x128xf32>
        %109 = arith.extf %107 : vector<16x128xbf16> to vector<16x128xf32>
        %110 = vector.broadcast %108 : vector<1x128xf32> to vector<16x128xf32>
        %111 = arith.mulf %109, %110 : vector<16x128xf32>
        %112 = arith.addf %106, %111 : vector<16x128xf32>
        %113 = vector.extract_strided_slice %53 {offsets = [9, 0], sizes = [16, 128], strides = [1, 1]} : vector<32x128xbf16> to vector<16x128xbf16>
        %c8_60 = arith.constant 8 : index
        %c0_61 = arith.constant 0 : index
        %114 = vector.load %arg4[%c8_60, %c0_61] : memref<25x128xf32, #tpu.memory_space<vmem>>, vector<1x128xf32>
        %115 = arith.extf %113 : vector<16x128xbf16> to vector<16x128xf32>
        %116 = vector.broadcast %114 : vector<1x128xf32> to vector<16x128xf32>
        %117 = arith.mulf %115, %116 : vector<16x128xf32>
        %118 = arith.addf %112, %117 : vector<16x128xf32>
        %119 = vector.extract_strided_slice %53 {offsets = [10, 0], sizes = [16, 128], strides = [1, 1]} : vector<32x128xbf16> to vector<16x128xbf16>
        %c9 = arith.constant 9 : index
        %c0_62 = arith.constant 0 : index
        %120 = vector.load %arg4[%c9, %c0_62] : memref<25x128xf32, #tpu.memory_space<vmem>>, vector<1x128xf32>
        %121 = arith.extf %119 : vector<16x128xbf16> to vector<16x128xf32>
        %122 = vector.broadcast %120 : vector<1x128xf32> to vector<16x128xf32>
        %123 = arith.mulf %121, %122 : vector<16x128xf32>
        %124 = arith.addf %118, %123 : vector<16x128xf32>
        %125 = vector.extract_strided_slice %57 {offsets = [6, 0], sizes = [16, 128], strides = [1, 1]} : vector<32x128xbf16> to vector<16x128xbf16>
        %c10 = arith.constant 10 : index
        %c0_63 = arith.constant 0 : index
        %126 = vector.load %arg4[%c10, %c0_63] : memref<25x128xf32, #tpu.memory_space<vmem>>, vector<1x128xf32>
        %127 = arith.extf %125 : vector<16x128xbf16> to vector<16x128xf32>
        %128 = vector.broadcast %126 : vector<1x128xf32> to vector<16x128xf32>
        %129 = arith.mulf %127, %128 : vector<16x128xf32>
        %130 = arith.addf %124, %129 : vector<16x128xf32>
        %131 = vector.extract_strided_slice %57 {offsets = [7, 0], sizes = [16, 128], strides = [1, 1]} : vector<32x128xbf16> to vector<16x128xbf16>
        %c11 = arith.constant 11 : index
        %c0_64 = arith.constant 0 : index
        %132 = vector.load %arg4[%c11, %c0_64] : memref<25x128xf32, #tpu.memory_space<vmem>>, vector<1x128xf32>
        %133 = arith.extf %131 : vector<16x128xbf16> to vector<16x128xf32>
        %134 = vector.broadcast %132 : vector<1x128xf32> to vector<16x128xf32>
        %135 = arith.mulf %133, %134 : vector<16x128xf32>
        %136 = arith.addf %130, %135 : vector<16x128xf32>
        %137 = vector.extract_strided_slice %57 {offsets = [8, 0], sizes = [16, 128], strides = [1, 1]} : vector<32x128xbf16> to vector<16x128xbf16>
        %c12 = arith.constant 12 : index
        %c0_65 = arith.constant 0 : index
        %138 = vector.load %arg4[%c12, %c0_65] : memref<25x128xf32, #tpu.memory_space<vmem>>, vector<1x128xf32>
        %139 = arith.extf %137 : vector<16x128xbf16> to vector<16x128xf32>
        %140 = vector.broadcast %138 : vector<1x128xf32> to vector<16x128xf32>
        %141 = arith.mulf %139, %140 : vector<16x128xf32>
        %142 = arith.addf %136, %141 : vector<16x128xf32>
        %143 = vector.extract_strided_slice %57 {offsets = [9, 0], sizes = [16, 128], strides = [1, 1]} : vector<32x128xbf16> to vector<16x128xbf16>
        %c13 = arith.constant 13 : index
        %c0_66 = arith.constant 0 : index
        %144 = vector.load %arg4[%c13, %c0_66] : memref<25x128xf32, #tpu.memory_space<vmem>>, vector<1x128xf32>
        %145 = arith.extf %143 : vector<16x128xbf16> to vector<16x128xf32>
        %146 = vector.broadcast %144 : vector<1x128xf32> to vector<16x128xf32>
        %147 = arith.mulf %145, %146 : vector<16x128xf32>
        %148 = arith.addf %142, %147 : vector<16x128xf32>
        %149 = vector.extract_strided_slice %57 {offsets = [10, 0], sizes = [16, 128], strides = [1, 1]} : vector<32x128xbf16> to vector<16x128xbf16>
        %c14 = arith.constant 14 : index
        %c0_67 = arith.constant 0 : index
        %150 = vector.load %arg4[%c14, %c0_67] : memref<25x128xf32, #tpu.memory_space<vmem>>, vector<1x128xf32>
        %151 = arith.extf %149 : vector<16x128xbf16> to vector<16x128xf32>
        %152 = vector.broadcast %150 : vector<1x128xf32> to vector<16x128xf32>
        %153 = arith.mulf %151, %152 : vector<16x128xf32>
        %154 = arith.addf %148, %153 : vector<16x128xf32>
        %155 = vector.extract_strided_slice %61 {offsets = [6, 0], sizes = [16, 128], strides = [1, 1]} : vector<32x128xbf16> to vector<16x128xbf16>
        %c15 = arith.constant 15 : index
        %c0_68 = arith.constant 0 : index
        %156 = vector.load %arg4[%c15, %c0_68] : memref<25x128xf32, #tpu.memory_space<vmem>>, vector<1x128xf32>
        %157 = arith.extf %155 : vector<16x128xbf16> to vector<16x128xf32>
        %158 = vector.broadcast %156 : vector<1x128xf32> to vector<16x128xf32>
        %159 = arith.mulf %157, %158 : vector<16x128xf32>
        %160 = arith.addf %154, %159 : vector<16x128xf32>
        %161 = vector.extract_strided_slice %61 {offsets = [7, 0], sizes = [16, 128], strides = [1, 1]} : vector<32x128xbf16> to vector<16x128xbf16>
        %c16 = arith.constant 16 : index
        %c0_69 = arith.constant 0 : index
        %162 = vector.load %arg4[%c16, %c0_69] : memref<25x128xf32, #tpu.memory_space<vmem>>, vector<1x128xf32>
        %163 = arith.extf %161 : vector<16x128xbf16> to vector<16x128xf32>
        %164 = vector.broadcast %162 : vector<1x128xf32> to vector<16x128xf32>
        %165 = arith.mulf %163, %164 : vector<16x128xf32>
        %166 = arith.addf %160, %165 : vector<16x128xf32>
        %167 = vector.extract_strided_slice %61 {offsets = [8, 0], sizes = [16, 128], strides = [1, 1]} : vector<32x128xbf16> to vector<16x128xbf16>
        %c17 = arith.constant 17 : index
        %c0_70 = arith.constant 0 : index
        %168 = vector.load %arg4[%c17, %c0_70] : memref<25x128xf32, #tpu.memory_space<vmem>>, vector<1x128xf32>
        %169 = arith.extf %167 : vector<16x128xbf16> to vector<16x128xf32>
        %170 = vector.broadcast %168 : vector<1x128xf32> to vector<16x128xf32>
        %171 = arith.mulf %169, %170 : vector<16x128xf32>
        %172 = arith.addf %166, %171 : vector<16x128xf32>
        %173 = vector.extract_strided_slice %61 {offsets = [9, 0], sizes = [16, 128], strides = [1, 1]} : vector<32x128xbf16> to vector<16x128xbf16>
        %c18_71 = arith.constant 18 : index
        %c0_72 = arith.constant 0 : index
        %174 = vector.load %arg4[%c18_71, %c0_72] : memref<25x128xf32, #tpu.memory_space<vmem>>, vector<1x128xf32>
        %175 = arith.extf %173 : vector<16x128xbf16> to vector<16x128xf32>
        %176 = vector.broadcast %174 : vector<1x128xf32> to vector<16x128xf32>
        %177 = arith.mulf %175, %176 : vector<16x128xf32>
        %178 = arith.addf %172, %177 : vector<16x128xf32>
        %179 = vector.extract_strided_slice %61 {offsets = [10, 0], sizes = [16, 128], strides = [1, 1]} : vector<32x128xbf16> to vector<16x128xbf16>
        %c19 = arith.constant 19 : index
        %c0_73 = arith.constant 0 : index
        %180 = vector.load %arg4[%c19, %c0_73] : memref<25x128xf32, #tpu.memory_space<vmem>>, vector<1x128xf32>
        %181 = arith.extf %179 : vector<16x128xbf16> to vector<16x128xf32>
        %182 = vector.broadcast %180 : vector<1x128xf32> to vector<16x128xf32>
        %183 = arith.mulf %181, %182 : vector<16x128xf32>
        %184 = arith.addf %178, %183 : vector<16x128xf32>
        %185 = vector.extract_strided_slice %65 {offsets = [6, 0], sizes = [16, 128], strides = [1, 1]} : vector<32x128xbf16> to vector<16x128xbf16>
        %c20 = arith.constant 20 : index
        %c0_74 = arith.constant 0 : index
        %186 = vector.load %arg4[%c20, %c0_74] : memref<25x128xf32, #tpu.memory_space<vmem>>, vector<1x128xf32>
        %187 = arith.extf %185 : vector<16x128xbf16> to vector<16x128xf32>
        %188 = vector.broadcast %186 : vector<1x128xf32> to vector<16x128xf32>
        %189 = arith.mulf %187, %188 : vector<16x128xf32>
        %190 = arith.addf %184, %189 : vector<16x128xf32>
        %191 = vector.extract_strided_slice %65 {offsets = [7, 0], sizes = [16, 128], strides = [1, 1]} : vector<32x128xbf16> to vector<16x128xbf16>
        %c21 = arith.constant 21 : index
        %c0_75 = arith.constant 0 : index
        %192 = vector.load %arg4[%c21, %c0_75] : memref<25x128xf32, #tpu.memory_space<vmem>>, vector<1x128xf32>
        %193 = arith.extf %191 : vector<16x128xbf16> to vector<16x128xf32>
        %194 = vector.broadcast %192 : vector<1x128xf32> to vector<16x128xf32>
        %195 = arith.mulf %193, %194 : vector<16x128xf32>
        %196 = arith.addf %190, %195 : vector<16x128xf32>
        %197 = vector.extract_strided_slice %65 {offsets = [8, 0], sizes = [16, 128], strides = [1, 1]} : vector<32x128xbf16> to vector<16x128xbf16>
        %c22 = arith.constant 22 : index
        %c0_76 = arith.constant 0 : index
        %198 = vector.load %arg4[%c22, %c0_76] : memref<25x128xf32, #tpu.memory_space<vmem>>, vector<1x128xf32>
        %199 = arith.extf %197 : vector<16x128xbf16> to vector<16x128xf32>
        %200 = vector.broadcast %198 : vector<1x128xf32> to vector<16x128xf32>
        %201 = arith.mulf %199, %200 : vector<16x128xf32>
        %202 = arith.addf %196, %201 : vector<16x128xf32>
        %203 = vector.extract_strided_slice %65 {offsets = [9, 0], sizes = [16, 128], strides = [1, 1]} : vector<32x128xbf16> to vector<16x128xbf16>
        %c23 = arith.constant 23 : index
        %c0_77 = arith.constant 0 : index
        %204 = vector.load %arg4[%c23, %c0_77] : memref<25x128xf32, #tpu.memory_space<vmem>>, vector<1x128xf32>
        %205 = arith.extf %203 : vector<16x128xbf16> to vector<16x128xf32>
        %206 = vector.broadcast %204 : vector<1x128xf32> to vector<16x128xf32>
        %207 = arith.mulf %205, %206 : vector<16x128xf32>
        %208 = arith.addf %202, %207 : vector<16x128xf32>
        %209 = vector.extract_strided_slice %65 {offsets = [10, 0], sizes = [16, 128], strides = [1, 1]} : vector<32x128xbf16> to vector<16x128xbf16>
        %c24_78 = arith.constant 24 : index
        %c0_79 = arith.constant 0 : index
        %210 = vector.load %arg4[%c24_78, %c0_79] : memref<25x128xf32, #tpu.memory_space<vmem>>, vector<1x128xf32>
        %211 = arith.extf %209 : vector<16x128xbf16> to vector<16x128xf32>
        %212 = vector.broadcast %210 : vector<1x128xf32> to vector<16x128xf32>
        %213 = arith.mulf %211, %212 : vector<16x128xf32>
        %214 = arith.addf %208, %213 : vector<16x128xf32>
        %c0_80 = arith.constant 0 : index
        %c0_81 = arith.constant 0 : index
        %215 = vector.load %arg5[%c0_80, %c0_81] : memref<1x128xf32, #tpu.memory_space<vmem>>, vector<1x128xf32>
        %216 = vector.broadcast %215 : vector<1x128xf32> to vector<16x128xf32>
        %217 = arith.addf %214, %216 : vector<16x128xf32>
        %cst_82 = arith.constant 5.000000e-01 : f32
        %218 = vector.broadcast %cst_82 : f32 to vector<16x128xf32>
        %219 = arith.mulf %218, %217 : vector<16x128xf32>
        %cst_83 = arith.constant 4.471500e-02 : f32
        %220 = vector.broadcast %cst_83 : f32 to vector<16x128xf32>
        %221 = arith.mulf %220, %217 : vector<16x128xf32>
        %222 = arith.mulf %221, %217 : vector<16x128xf32>
        %223 = arith.mulf %222, %217 : vector<16x128xf32>
        %224 = arith.addf %217, %223 : vector<16x128xf32>
        %cst_84 = arith.constant 0.797884583 : f32
        %225 = vector.broadcast %cst_84 : f32 to vector<16x128xf32>
        %226 = arith.mulf %225, %224 : vector<16x128xf32>
        %227 = math.tanh %226 : vector<16x128xf32>
        %cst_85 = arith.constant 1.000000e+00 : f32
        %228 = vector.broadcast %cst_85 : f32 to vector<16x128xf32>
        %229 = arith.addf %228, %227 : vector<16x128xf32>
        %230 = arith.mulf %219, %229 : vector<16x128xf32>
        %231 = vector.extract_strided_slice %57 {offsets = [8, 0], sizes = [16, 128], strides = [1, 1]} : vector<32x128xbf16> to vector<16x128xbf16>
        %c16_i32_86 = arith.constant 16 : i32
        %232 = arith.muli %arg12, %c16_i32_86 : i32
        %233 = tpu.assume_multiple %232, 8 : i32
        %234 = arith.extf %231 : vector<16x128xbf16> to vector<16x128xf32>
        %235 = arith.addf %234, %230 : vector<16x128xf32>
        %236 = arith.truncf %235 : vector<16x128xf32> to vector<16x128xbf16>
        %237 = arith.index_cast %233 : i32 to index
        %c0_87 = arith.constant 0 : index
        %238 = vector.load %arg10[%237, %c0_87] : memref<128x128xbf16, #tpu.memory_space<vmem>>, vector<16x128xbf16>
        tpu.vector_store %arg10[%237, %c0_87], %236 {strides = array<i32>} : memref<128x128xbf16, #tpu.memory_space<vmem>>, vector<16x128xbf16>,
      }
      %c8_i32_27 = arith.constant 8 : i32
      %c0_28 = arith.constant 0 : index
      %c0_29 = arith.constant 0 : index
      %33 = vector.load %arg10[%c0_28, %c0_29] : memref<128x128xbf16, #tpu.memory_space<vmem>>, vector<128x128xbf16>
      %c0_30 = arith.constant 0 : index
      %c0_31 = arith.constant 0 : index
      %34 = vector.load %arg6[%c0_30, %c0_31] : memref<128x128xbf16, #tpu.memory_space<vmem>>, vector<128x128xbf16>
      %cst_32 = arith.constant dense<0.000000e+00> : vector<128x128xf32>
      %35 = tpu.matmul %33, %34, %cst_32 {dimension_numbers = #tpu.dot_dimension_numbers<[1], [0], [0], [1], [0, 0, 1, 1], [], []>} : vector<128x128xbf16>, vector<128x128xbf16>, vector<128x128xf32> -> vector<128x128xf32>
      %c16_i32 = arith.constant 16 : i32
      %36 = arith.muli %31, %c16_i32 : i32
      %37 = tpu.assume_multiple %36, 8 : i32
      %c0_33 = arith.constant 0 : index
      %c0_34 = arith.constant 0 : index
      %38 = vector.load %arg7[%c0_33, %c0_34] : memref<1x128xf32, #tpu.memory_space<vmem>>, vector<1x128xf32>
      %39 = vector.broadcast %38 : vector<1x128xf32> to vector<128x128xf32>
      %40 = arith.addf %35, %39 : vector<128x128xf32>
      %c0_35 = arith.constant 0 : index
      %41 = arith.index_cast %37 : i32 to index
      %c0_36 = arith.constant 0 : index
      %42 = vector.load %arg8[%c0_35, %41, %c0_36] : memref<1x256x128xf32, #tpu.memory_space<vmem>>, vector<1x128x128xf32>
      %43 = vector.shape_cast %42 : vector<1x128x128xf32> to vector<128x128xf32>
      %44 = vector.shape_cast %40 : vector<128x128xf32> to vector<1x128x128xf32>
      tpu.vector_store %arg8[%c0_35, %41, %c0_36], %44 {strides = array<i32>} : memref<1x256x128xf32, #tpu.memory_space<vmem>>, vector<1x128x128xf32>,
    }
    %c2_i32_23 = arith.constant 2 : i32
    return
  }
  func.func @transform_0(%arg0: i32) -> (i32, i32, i32) {
    %c0_i32 = arith.constant 0 : i32
    %c0_i32_0 = arith.constant 0 : i32
    %c0_i32_1 = arith.constant 0 : i32
    return %arg0, %c0_i32, %c0_i32_0 : i32, i32, i32
  }
  func.func @transform_1(%arg0: i32) -> (i32, i32) {
    %c0_i32 = arith.constant 0 : i32
    %c0_i32_0 = arith.constant 0 : i32
    %c0_i32_1 = arith.constant 0 : i32
    return %c0_i32, %c0_i32_0 : i32, i32
  }
  func.func @transform_2(%arg0: i32) -> (i32, i32) {
    %c0_i32 = arith.constant 0 : i32
    %c0_i32_0 = arith.constant 0 : i32
    %c0_i32_1 = arith.constant 0 : i32
    return %c0_i32, %c0_i32_0 : i32, i32
  }
  func.func @transform_3(%arg0: i32) -> (i32, i32) {
    %c0_i32 = arith.constant 0 : i32
    %c0_i32_0 = arith.constant 0 : i32
    %c0_i32_1 = arith.constant 0 : i32
    return %c0_i32, %c0_i32_0 : i32, i32
  }
  func.func @transform_4(%arg0: i32) -> (i32, i32) {
    %c0_i32 = arith.constant 0 : i32
    %c0_i32_0 = arith.constant 0 : i32
    %c0_i32_1 = arith.constant 0 : i32
    return %c0_i32, %c0_i32_0 : i32, i32
  }
  func.func @transform_5(%arg0: i32) -> (i32, i32) {
    %c0_i32 = arith.constant 0 : i32
    %c0_i32_0 = arith.constant 0 : i32
    %c0_i32_1 = arith.constant 0 : i32
    return %c0_i32, %c0_i32_0 : i32, i32
  }
  func.func @transform_6(%arg0: i32) -> (i32, i32) {
    %c0_i32 = arith.constant 0 : i32
    %c0_i32_0 = arith.constant 0 : i32
    %c0_i32_1 = arith.constant 0 : i32
    return %c0_i32, %c0_i32_0 : i32, i32
  }
  func.func @transform_7(%arg0: i32) -> (i32, i32, i32) {
    %c0_i32 = arith.constant 0 : i32
    %c0_i32_0 = arith.constant 0 : i32
    %c0_i32_1 = arith.constant 0 : i32
    return %arg0, %c0_i32, %c0_i32_0 : i32, i32, i32
  }
}

</mosaic_0001>

<bundles_post_ra>
// kernel: tpu_custom_call.1
= control target key start
LH: loop header
LB: loop body
LE: loop exit
PB: predicated region body
PF: predicated region fallthrough
CT: control target
= control target key end

     0   :  { %12 = vsyncpa [#allocation5], 0  ;;  %s2958_s0 = inlined_call_operand.vmem [shape: f32[2,256,16], index: 0, kind: input, shape index: {}]   ;;  %s2959_s1 = inlined_call_operand.vmem [shape: bf16[16,128], index: 1, kind: input, shape index: {}]   ;;  %s2960_s2 = inlined_call_operand.vmem [shape: f32[1,128], index: 2, kind: input, shape index: {}]   ;;  %s2961_s3 = inlined_call_operand.vmem [shape: f32[25,128], index: 3, kind: input, shape index: {}]   ;;  %s2962_s4 = inlined_call_operand.vmem [shape: f32[1,128], index: 4, kind: input, shape index: {}]   ;;  %s2963_s5 = inlined_call_operand.vmem [shape: bf16[128,128], index: 5, kind: input, shape index: {}]   ;;  %s2964_s6 = inlined_call_operand.vmem [shape: f32[1,128], index: 6, kind: input, shape index: {}]   ;;  %s2965_s7 = inlined_call_operand.hbm [shape: f32[2,256,128], index: 7, kind: output, shape index: {}]  }
   0x1   :  { %14 = vsyncpa [#allocation5 + $0x1], 0  ;;  %s2229_s24 = smov 0   ;;  %s2231_s25 = smov 0  }
   0x2   :  { %s2233_s26 = smov 0   ;;  %s2235_s27 = smov 0  }
   0x3 LB: > { %s2250_s28 = sadd.s32 4294967295, %s2176_s27   ;;  %s1723_s29 = sadd.s32 4294967294, %s2176_s27   ;;  %s2176_s27 = sphi %s2235_s27, %s2971_s27   ;;  %s2172_s26 = sphi %s2233_s26, %s2970_s26   ;;  %s2168_s25 = sphi %s2231_s25, %s2969_s25   ;;  %s2164_s24 = sphi %s2229_s24, %s2968_s24  }
   0x4   : > { %s2254_s30 = sadd.s32 1, %s2176_s27   ;;  %s179_s8 = sadd.s32 1, %s2172_s26 }
   0x5   : > { %s176_s9 = ssub.s32 %s2176_s27, %s2254_s30  ;;  %p189_p0 = scmp.ne.s32.totalorder %s2172_s26, %s2168_s25 }
   0x6   : > { %p177_p1 = scmp.eq.s32.totalorder %s176_s9, 0  ;;  %p190_p2 = scmp.eq.s32.totalorder %s2250_s28, 1 }
   0x7   : > { %p195_p3 = scmp.ne.s32.totalorder %s2168_s25, %s2164_s24  ;;  %p196_p4 = scmp.eq.s32.totalorder %s1723_s29, 1 }
   0x8   : > { %s2265_s10 = scalar_select %p177_p1, %s2172_s26, %s179_s8  }
   0x9   : > { %p2267_p5 = por %p190_p2, %p189_p0  ;;  %p2271_p6 = por %p196_p4, %p195_p3 }
   0xa   : > { %p1726_p7 = scmp.ge.s32.totalorder %s2176_s27, 1  ;;  %p240_p8 = scmp.lt.s32.totalorder %s2176_s27, 3 }
   0xc   : > { %p241_p9 = pnand %p1726_p7, %p240_p8 }
   0xd   : > { %s269_s13 = sand.u32 (!%p241_p9), 1, %s2168_s25   ;;  %p272_p10 = scmp.lt.s32.totalorder (!%p241_p9), %s2250_s28, 1 }
   0xe   : > { %244 = sbr.rel (%p241_p9) target bundleno = 589 (0x24d), region = 48  ;;  %s2284_s16 = sshll.u32 (!%p241_p9), %s269_s13, 8 }
   0xf   : > { %s271_s29 = scalar_lea.vmem (!%p241_p9), [#allocation4], %s2284_s16  ;;  %s2615_s8 = smov (!%p241_p9), 0  }
  0x13   : > { %v1850_v0 = vld [vmem:[%s2959_s1] sm:$0xff]  ;;  %s273_s17 = scalar_select %p272_p10, %s2250_s28, 1  ;;  %vm338_vm0 = vcmask 130048  }
  0x14   : > { %394 = vmatpush.bf16.msra.mxu0 %v1850_v0  ;;  %1923 = vmatpush.bf16.msra.mxu1 %v1850_v0  ;;  %v2343_v49 = vld [vmem:[%s2960_s2] ss:$0 sm:$0xff] }
  0x15   : > { %1924 = vmatpush.bf16.msra.mxu2 %v1850_v0  ;;  %1925 = vmatpush.bf16.msra.mxu3 %v1850_v0  ;;  %s1849_s18 = sshll.u32 %s273_s17, 8 }
  0x16   : > { %s2290_s21 = scalar_lea.vmem %s2958_s0, %s1849_s18 }
  0x17   : > { %v278_v1 = vld [vmem:[%s2290_s21] sm:$0xff]  ;;  %v279_v2 = vld [vmem:[%s2290_s21 + $0x8] sm:$0xff]  ;;  %v280_v13 = vld [vmem:[%s2290_s21 + $0x10] sm:$0xff] }
  0x18   : > { %v286_v3 = vld [vmem:[%s2290_s21 + $0x40] sm:$0xff]  ;;  %v310_v4 = vpack.c.bf16 %v279_v2, %v278_v1  ;;  %v287_v5 = vld [vmem:[%s2290_s21 + $0x48] sm:$0xff]  ;;  %v281_v14 = vld [vmem:[%s2290_s21 + $0x18] sm:$0xff] }
  0x19   : > { %v294_v6 = vld [vmem:[%s2290_s21 + $0x80] sm:$0xff]  ;;  %v295_v7 = vld [vmem:[%s2290_s21 + $0x88] sm:$0xff]  ;;  %v314_v8 = vpack.c.bf16 %v287_v5, %v286_v3  ;;  %v288_v15 = vld [vmem:[%s2290_s21 + $0x50] sm:$0xff]  ;;  %v311_v21 = vpack.c.bf16 %v281_v14, %v280_v13 }
  0x1a   : > { %v318_v9 = vpack.c.bf16 %v295_v7, %v294_v6  ;;  %v302_v10 = vld [vmem:[%s2290_s21 + $0xc0] sm:$0xff]  ;;  %v303_v11 = vld [vmem:[%s2290_s21 + $0xc8] sm:$0xff]  ;;  %1734 = vmatmul.msk.bf16.vlgmr.msra.gmra.mxu0 %vm338_vm0, %v310_v4  ;;  %v289_v16 = vld [vmem:[%s2290_s21 + $0x58] sm:$0xff] }
  0x1b   : > { %v322_v12 = vpack.c.bf16 %v303_v11, %v302_v10  ;;  %1738 = vmatmul.msk.bf16.vlgmr.msra.gmra.mxu1 %vm338_vm0, %v314_v8  ;;  %v296_v17 = vld [vmem:[%s2290_s21 + $0x90] sm:$0xff]  ;;  %v297_v18 = vld [vmem:[%s2290_s21 + $0x98] sm:$0xff]  ;;  %v315_v22 = vpack.c.bf16 %v289_v16, %v288_v15  ;;  %v282_v25 = vld [vmem:[%s2290_s21 + $0x20] sm:$0xff] }
  0x1c   : > { %1742 = vmatmul.msk.bf16.vlgmr.msra.gmra.mxu2 %vm338_vm0, %v318_v9  ;;  %v304_v19 = vld [vmem:[%s2290_s21 + $0xd0] sm:$0xff]  ;;  %v305_v20 = vld [vmem:[%s2290_s21 + $0xd8] sm:$0xff]  ;;  %v319_v23 = vpack.c.bf16 %v297_v18, %v296_v17  ;;  %v283_v26 = vld [vmem:[%s2290_s21 + $0x28] sm:$0xff] }
  0x1d   : > { %1746 = vmatmul.msk.bf16.vlgmr.msra.gmra.mxu3 %vm338_vm0, %v322_v12  ;;  %v323_v24 = vpack.c.bf16 %v305_v20, %v304_v19  ;;  %v290_v27 = vld [vmem:[%s2290_s21 + $0x60] sm:$0xff]  ;;  %v291_v28 = vld [vmem:[%s2290_s21 + $0x68] sm:$0xff]  ;;  %v312_v33 = vpack.c.bf16 %v283_v26, %v282_v25  ;;  %v284_v37 = vld [vmem:[%s2290_s21 + $0x30] sm:$0xff] }
  0x1e   : > { %v298_v29 = vld [vmem:[%s2290_s21 + $0xa0] sm:$0xff]  ;;  %v299_v30 = vld [vmem:[%s2290_s21 + $0xa8] sm:$0xff]  ;;  %v316_v34 = vpack.c.bf16 %v291_v28, %v290_v27  ;;  %v285_v38 = vld [vmem:[%s2290_s21 + $0x38] sm:$0xff] }
  0x1f   : > { %v306_v31 = vld [vmem:[%s2290_s21 + $0xe0] sm:$0xff]  ;;  %v307_v32 = vld [vmem:[%s2290_s21 + $0xe8] sm:$0xff]  ;;  %v320_v35 = vpack.c.bf16 %v299_v30, %v298_v29  ;;  %v292_v39 = vld [vmem:[%s2290_s21 + $0x70] sm:$0xff]  ;;  %v313_v45 = vpack.c.bf16 %v285_v38, %v284_v37 }
  0x20   : > { %v324_v36 = vpack.c.bf16 %v307_v32, %v306_v31  ;;  %v293_v40 = vld [vmem:[%s2290_s21 + $0x78] sm:$0xff]  ;;  %v300_v41 = vld [vmem:[%s2290_s21 + $0xb0] sm:$0xff] }
  0x21   : > { %v301_v42 = vld [vmem:[%s2290_s21 + $0xb8] sm:$0xff]  ;;  %v308_v43 = vld [vmem:[%s2290_s21 + $0xf0] sm:$0xff]  ;;  %v317_v46 = vpack.c.bf16 %v293_v40, %v292_v39 }
  0x22   : > { %v309_v44 = vld [vmem:[%s2290_s21 + $0xf8] sm:$0xff]  ;;  %v321_v47 = vpack.c.bf16 %v301_v42, %v300_v41 }
  0x23   : > { %v325_v48 = vpack.c.bf16 %v309_v44, %v308_v43 }
  0x2a   : > { %1735 = vmatmul.msk.bf16.gmra.mxu0 %vm338_vm0, %v311_v21 }
  0x2b   : > { %1739 = vmatmul.msk.bf16.gmra.mxu1 %vm338_vm0, %v315_v22 }
  0x2c   : > { %1743 = vmatmul.msk.bf16.gmra.mxu2 %vm338_vm0, %v319_v23 }
  0x2d   : > { %1747 = vmatmul.msk.bf16.gmra.mxu3 %vm338_vm0, %v323_v24 }
  0x3a   : > { %1736 = vmatmul.msk.bf16.gmra.mxu0 %vm338_vm0, %v312_v33 }
  0x3b   : > { %1740 = vmatmul.msk.bf16.gmra.mxu1 %vm338_vm0, %v316_v34 }
  0x3c   : > { %1744 = vmatmul.msk.bf16.gmra.mxu2 %vm338_vm0, %v320_v35 }
  0x3d   : > { %1748 = vmatmul.msk.bf16.gmra.mxu3 %vm338_vm0, %v324_v36 }
  0x4a   : > { %1737 = vmatmul.msk.bf16.gmra.mxu0 %vm338_vm0, %v313_v45 }
  0x4b   : > { %1741 = vmatmul.msk.bf16.gmra.mxu1 %vm338_vm0, %v317_v46 }
  0x4c   : > { %1745 = vmatmul.msk.bf16.gmra.mxu2 %vm338_vm0, %v321_v47 }
  0x4d   : > { %1749 = vmatmul.msk.bf16.gmra.mxu3 %vm338_vm0, %v325_v48 }
  0x97   : > { %v396_v50 = vpop.f32.mrf.mxu0 }
  0x98   : > { %v397_v51 = vadd.f32 %v2343_v49, %v396_v50  ;;  %v416_v52 = vpop.f32.mrf.mxu1 }
  0x99   : > { %v417_v53 = vadd.f32 %v2343_v49, %v416_v52 }
  0x9a   : > { %v508_v54 = vmul.f32 0.044715, %v397_v51  ;;  %v476_v19 = vmul.f32 0.5, %v397_v51 }
  0x9b   : > { %v516_v55 = vmul.f32 0.044715, %v417_v53  ;;  %v484_v25 = vmul.f32 0.5, %v417_v53 }
  0x9c   : > { %v540_v56 = vmul.f32 %v508_v54, %v397_v51 }
  0x9d   : > { %v548_v57 = vmul.f32 %v516_v55, %v417_v53 }
  0x9e   : > { %v572_v58 = vmul.f32 %v540_v56, %v397_v51 }
  0x9f   : > { %v436_v59 = vpop.f32.mrf.mxu2  ;;  %v580_v60 = vmul.f32 %v548_v57, %v417_v53  ;;  %v398_v63 = vpop.f32.mrf.mxu0 }
  0xa0   : > { %v437_v61 = vadd.f32 %v2343_v49, %v436_v59  ;;  %v456_v62 = vpop.f32.mrf.mxu3  ;;  %v604_v0 = vadd.f32 %v572_v58, %v397_v51  ;;  %v2350_v2 = vadd.f32 %v2343_v49, %v398_v63  ;;  %v418_v3 = vpop.f32.mrf.mxu1 }
  0xa1   : > { %v457_v1 = vadd.f32 %v2343_v49, %v456_v62  ;;  %v612_v4 = vadd.f32 %v580_v60, %v417_v53  ;;  %v2353_v6 = vadd.f32 %v2343_v49, %v418_v3 }
  0xa2   : > { %v524_v5 = vmul.f32 0.044715, %v437_v61  ;;  %v636_v7 = vmul.f32 0.7978846, %v604_v0  ;;  %v509_v11 = vmul.f32 0.044715, %v2350_v2 }
  0xa3   : > { %v532_v8 = vmul.f32 0.044715, %v457_v1  ;;  %v644_v9 = vmul.f32 0.7978846, %v612_v4  ;;  %v517_v13 = vmul.f32 0.044715, %v2353_v6 }
  0xa4   : > { %v556_v10 = vmul.f32 %v524_v5, %v437_v61  ;;  %2009 = vtanh.f32 %v636_v7  ;;  %v541_v15 = vmul.f32 %v509_v11, %v2350_v2  ;;  %v492_v29 = vmul.f32 0.5, %v437_v61 }
  0xa5   : > { %v564_v12 = vmul.f32 %v532_v8, %v457_v1  ;;  %2011 = vtanh.f32 %v644_v9  ;;  %v549_v17 = vmul.f32 %v517_v13, %v2353_v6  ;;  %v500_v47 = vmul.f32 0.5, %v457_v1 }
  0xa6   : > { %v588_v14 = vmul.f32 %v556_v10, %v437_v61  ;;  %v573_v21 = vmul.f32 %v541_v15, %v2350_v2 }
  0xa7   : > { %v596_v16 = vmul.f32 %v564_v12, %v457_v1  ;;  %v438_v18 = vpop.f32.mrf.mxu2  ;;  %v401_v24 = vpop.f32.mrf.mxu0  ;;  %v581_v27 = vmul.f32 %v549_v17, %v2353_v6 }
  0xa8   : > { %v620_v20 = vadd.f32 %v588_v14, %v437_v61  ;;  %v439_v22 = vadd.f32 %v2343_v49, %v438_v18  ;;  %v458_v23 = vpop.f32.mrf.mxu3  ;;  %v605_v31 = vadd.f32 %v573_v21, %v2350_v2  ;;  %v2369_v37 = vadd.f32 %v2343_v49, %v401_v24  ;;  %v421_v42 = vpop.f32.mrf.mxu1 }
  0xa9   : > { %v628_v26 = vadd.f32 %v596_v16, %v457_v1  ;;  %v2363_v28 = vadd.f32 %v2343_v49, %v458_v23  ;;  %v613_v35 = vadd.f32 %v581_v27, %v2353_v6  ;;  %v2375_v56 = vadd.f32 %v2343_v49, %v421_v42 }
  0xaa   : > { %v652_v30 = vmul.f32 0.7978846, %v620_v20  ;;  %v525_v32 = vmul.f32 0.044715, %v439_v22  ;;  %v2010_v33 = vpop.eup %2009  ;;  %v637_v40 = vmul.f32 0.7978846, %v605_v31 }
  0xab   : > { %v660_v34 = vmul.f32 0.7978846, %v628_v26  ;;  %v533_v36 = vmul.f32 0.044715, %v2363_v28  ;;  %v2012_v38 = vpop.eup %2011  ;;  %v700_v39 = vadd.f32 1.0, %v2010_v33  ;;  %v477_v61 = vmul.f32 0.5, %v2350_v2 }
  0xac   : > { %2013 = vtanh.f32 %v652_v30  ;;  %v557_v41 = vmul.f32 %v525_v32, %v439_v22  ;;  %v708_v43 = vadd.f32 1.0, %v2012_v38  ;;  %v645_v44 = vmul.f32 0.7978846, %v613_v35 }
  0xad   : > { %2015 = vtanh.f32 %v660_v34  ;;  %v565_v45 = vmul.f32 %v533_v36, %v2363_v28  ;;  %v732_v46 = vmul.f32 %v700_v39, %v476_v19  ;;  %v510_v52 = vmul.f32 0.044715, %v2369_v37 }
  0xae   : > { %2017 = vtanh.f32 %v637_v40  ;;  %v589_v48 = vmul.f32 %v557_v41, %v439_v22  ;;  %v740_v50 = vmul.f32 %v708_v43, %v484_v25  ;;  %v485_v1 = vmul.f32 0.5, %v2353_v6 }
  0xaf   : > { %2019 = vtanh.f32 %v645_v44  ;;  %v597_v51 = vmul.f32 %v565_v45, %v2363_v28  ;;  %v441_v53 = vpop.f32.mrf.mxu2  ;;  %v814_v54 = vpack.c.bf16 %v732_v46, %v732_v46  ;;  %v403_v59 = vpop.f32.mrf.mxu0  ;;  %v542_v63 = vmul.f32 %v510_v52, %v2369_v37 }
  0xb0   : > { %v621_v55 = vadd.f32 %v589_v48, %v439_v22  ;;  %v2378_v57 = vadd.f32 %v2343_v49, %v441_v53  ;;  %v461_v58 = vpop.f32.mrf.mxu3  ;;  %v822_v60 = vpack.c.bf16 %v740_v50, %v740_v50  ;;  %v493_v3 = vmul.f32 0.5, %v439_v22  ;;  %v423_v22 = vpop.f32.mrf.mxu1 }
  0xb1   : > { %v629_v62 = vadd.f32 %v597_v51, %v2363_v28  ;;  %846 = vst [vmem:[#allocation2 + $0x24] sm:$0xf] %v814_v54  ;;  %v2385_v5 = vadd.f32 %v2343_v49, %v461_v58  ;;  %v574_v10 = vmul.f32 %v542_v63, %v2369_v37  ;;  %v2389_v2 = vadd.f32 %v2343_v49, %v403_v59 }
  0xb2   : > { %v2014_v0 = vpop.eup %2013  ;;  %v653_v4 = vmul.f32 0.7978846, %v621_v55  ;;  %854 = vst [vmem:[#allocation2 + $0x64] sm:$0xf] %v822_v60  ;;  %v518_v13 = vmul.f32 0.044715, %v2375_v56  ;;  %v2407_v46 = vadd.f32 %v2343_v49, %v423_v22 }
  0xb3   : > { %v2016_v7 = vpop.eup %2015  ;;  %v716_v8 = vadd.f32 1.0, %v2014_v0  ;;  %v661_v9 = vmul.f32 0.7978846, %v629_v62  ;;  %v526_v6 = vmul.f32 0.044715, %v2378_v57  ;;  %v606_v17 = vadd.f32 %v574_v10, %v2369_v37 }
  0xb4   : > { %v2018_v11 = vpop.eup %2017  ;;  %v724_v12 = vadd.f32 1.0, %v2016_v7  ;;  %2021 = vtanh.f32 %v653_v4  ;;  %v550_v20 = vmul.f32 %v518_v13, %v2375_v56  ;;  %v534_v26 = vmul.f32 0.044715, %v2385_v5 }
  0xb5   : > { %v2020_v14 = vpop.eup %2019  ;;  %v748_v15 = vmul.f32 %v716_v8, %v492_v29  ;;  %v701_v16 = vadd.f32 1.0, %v2018_v11  ;;  %2023 = vtanh.f32 %v661_v9  ;;  %v558_v21 = vmul.f32 %v526_v6, %v2378_v57 }
  0xb6   : > { %v756_v18 = vmul.f32 %v724_v12, %v500_v47  ;;  %v709_v19 = vadd.f32 1.0, %v2020_v14  ;;  %v638_v25 = vmul.f32 0.7978846, %v606_v17  ;;  %v582_v29 = vmul.f32 %v550_v20, %v2375_v56 }
  0xb7   : > { %v830_v23 = vpack.c.bf16 %v748_v15, %v748_v15  ;;  %v733_v24 = vmul.f32 %v701_v16, %v477_v61  ;;  %v590_v31 = vmul.f32 %v558_v21, %v2378_v57  ;;  %v501_v33 = vmul.f32 0.5, %v2363_v28  ;;  %v443_v35 = vpop.f32.mrf.mxu2  ;;  %v406_v60 = vpop.f32.mrf.mxu0 }
  0xb8   : > { %v838_v27 = vpack.c.bf16 %v756_v18, %v756_v18  ;;  %v741_v30 = vmul.f32 %v709_v19, %v485_v1  ;;  %2025 = vtanh.f32 %v638_v25  ;;  %v566_v34 = vmul.f32 %v534_v26, %v2385_v5  ;;  %v463_v42 = vpop.f32.mrf.mxu3  ;;  %v426_v8 = vpop.f32.mrf.mxu1 }
  0xb9   : > { %862 = vst [vmem:[#allocation2 + $0xa4] sm:$0xf] %v830_v23  ;;  %v815_v32 = vpack.c.bf16 %v733_v24, %v733_v24  ;;  %v614_v39 = vadd.f32 %v582_v29, %v2375_v56  ;;  %v622_v40 = vadd.f32 %v590_v31, %v2378_v57  ;;  %v511_v41 = vmul.f32 0.044715, %v2389_v2 }
  0xba   : > { %v2022_v36 = vpop.eup %2021  ;;  %870 = vst [vmem:[#allocation2 + $0xe4] sm:$0xf] %v838_v27  ;;  %v823_v38 = vpack.c.bf16 %v741_v30, %v741_v30  ;;  %v478_v45 = vmul.f32 0.5, %v2369_v37  ;;  %v598_v28 = vmul.f32 %v566_v34, %v2385_v5  ;;  %v2411_v51 = vadd.f32 %v2343_v49, %v443_v35 }
  0xbb   : > { %v2024_v43 = vpop.eup %2023  ;;  %847 = vst [vmem:[#allocation2 + $0x28] sm:$0xf] %v815_v32  ;;  %v717_v44 = vadd.f32 1.0, %v2022_v36  ;;  %v646_v48 = vmul.f32 0.7978846, %v614_v39  ;;  %v543_v50 = vmul.f32 %v511_v41, %v2389_v2  ;;  %v2415_v55 = vadd.f32 %v2343_v49, %v463_v42 }
  0xbc   : > { %855 = vst [vmem:[#allocation2 + $0x68] sm:$0xf] %v823_v38  ;;  %v725_v47 = vadd.f32 1.0, %v2024_v43  ;;  %v654_v53 = vmul.f32 0.7978846, %v622_v40  ;;  %v630_v54 = vadd.f32 %v598_v28, %v2385_v5  ;;  %v486_v63 = vmul.f32 0.5, %v2375_v56 }
  0xbd   : > { %v749_v52 = vmul.f32 %v717_v44, %v493_v3  ;;  %2027 = vtanh.f32 %v646_v48  ;;  %v575_v58 = vmul.f32 %v543_v50, %v2389_v2  ;;  %v519_v59 = vmul.f32 0.044715, %v2407_v46 }
  0xbe   : > { %v757_v37 = vmul.f32 %v725_v47, %v501_v33  ;;  %v2026_v61 = vpop.eup %2025  ;;  %2029 = vtanh.f32 %v654_v53  ;;  %v662_v0 = vmul.f32 0.7978846, %v630_v54  ;;  %v494_v9 = vmul.f32 0.5, %v2378_v57 }
  0xbf   : > { %v831_v62 = vpack.c.bf16 %v749_v52, %v749_v52  ;;  %v702_v3 = vadd.f32 1.0, %v2026_v61  ;;  %v607_v4 = vadd.f32 %v575_v58, %v2389_v2  ;;  %v551_v7 = vmul.f32 %v519_v59, %v2407_v46  ;;  %v446_v17 = vpop.f32.mrf.mxu2  ;;  %v408_v50 = vpop.f32.mrf.mxu0 }
  0xc0   : > { %v839_v1 = vpack.c.bf16 %v757_v37, %v757_v37  ;;  %2031 = vtanh.f32 %v662_v0  ;;  %v527_v10 = vmul.f32 0.044715, %v2411_v51  ;;  %v2425_v11 = vadd.f32 %v2343_v49, %v406_v60  ;;  %v466_v43 = vpop.f32.mrf.mxu3  ;;  %v428_v37 = vpop.f32.mrf.mxu1 }
  0xc1   : > { %863 = vst [vmem:[#allocation2 + $0xa8] sm:$0xf] %v831_v62  ;;  %v734_v56 = vmul.f32 %v702_v3, %v478_v45  ;;  %v639_v12 = vmul.f32 0.7978846, %v607_v4  ;;  %v583_v13 = vmul.f32 %v551_v7, %v2407_v46  ;;  %v535_v6 = vmul.f32 0.044715, %v2415_v55 }
  0xc2   : > { %871 = vst [vmem:[#allocation2 + $0xe8] sm:$0xf] %v839_v1  ;;  %v502_v14 = vmul.f32 0.5, %v2385_v5  ;;  %v559_v15 = vmul.f32 %v527_v10, %v2411_v51  ;;  %v512_v16 = vmul.f32 0.044715, %v2425_v11  ;;  %v2433_v57 = vadd.f32 %v2343_v49, %v426_v8 }
  0xc3   : > { %v2028_v18 = vpop.eup %2027  ;;  %v816_v19 = vpack.c.bf16 %v734_v56, %v734_v56  ;;  %2033 = vtanh.f32 %v639_v12  ;;  %v615_v20 = vadd.f32 %v583_v13, %v2407_v46  ;;  %v567_v21 = vmul.f32 %v535_v6, %v2415_v55 }
  0xc4   : > { %v2030_v22 = vpop.eup %2029  ;;  %v710_v23 = vadd.f32 1.0, %v2028_v18  ;;  %v479_v24 = vmul.f32 0.5, %v2389_v2  ;;  %v591_v5 = vmul.f32 %v559_v15, %v2411_v51  ;;  %v544_v25 = vmul.f32 %v512_v16, %v2425_v11 }
  0xc5   : > { %848 = vst [vmem:[#allocation2 + $0x34] sm:$0xf] %v816_v19  ;;  %v718_v26 = vadd.f32 1.0, %v2030_v22  ;;  %v647_v27 = vmul.f32 0.7978846, %v615_v20  ;;  %v599_v30 = vmul.f32 %v567_v21, %v2415_v55  ;;  %v2442_v29 = vadd.f32 %v2343_v49, %v446_v17 }
  0xc6   : > { %v2032_v31 = vpop.eup %2031  ;;  %v742_v32 = vmul.f32 %v710_v23, %v486_v63  ;;  %v623_v33 = vadd.f32 %v591_v5, %v2411_v51  ;;  %v576_v34 = vmul.f32 %v544_v25, %v2425_v11  ;;  %v520_v2 = vmul.f32 0.044715, %v2433_v57 }
  0xc7   : > { %v750_v35 = vmul.f32 %v718_v26, %v494_v9  ;;  %v726_v36 = vadd.f32 1.0, %v2032_v31  ;;  %2035 = vtanh.f32 %v647_v27  ;;  %v631_v38 = vadd.f32 %v599_v30, %v2415_v55  ;;  %v448_v7 = vpop.f32.mrf.mxu2 }
  0xc8   : > { %v824_v39 = vpack.c.bf16 %v742_v32, %v742_v32  ;;  %v655_v40 = vmul.f32 0.7978846, %v623_v33  ;;  %v608_v41 = vadd.f32 %v576_v34, %v2425_v11  ;;  %v552_v42 = vmul.f32 %v520_v2, %v2433_v57  ;;  %v468_v25 = vpop.f32.mrf.mxu3  ;;  %v411_v32 = vpop.f32.mrf.mxu0 }
  0xc9   : > { %v2034_v44 = vpop.eup %2033  ;;  %v832_v45 = vpack.c.bf16 %v750_v35, %v750_v35  ;;  %v758_v28 = vmul.f32 %v726_v36, %v502_v14  ;;  %v487_v47 = vmul.f32 0.5, %v2407_v46  ;;  %v663_v48 = vmul.f32 0.7978846, %v631_v38 }
  0xca   : > { %856 = vst [vmem:[#allocation2 + $0x74] sm:$0xf] %v824_v39  ;;  %v703_v52 = vadd.f32 1.0, %v2034_v44  ;;  %2037 = vtanh.f32 %v655_v40  ;;  %v640_v53 = vmul.f32 0.7978846, %v608_v41  ;;  %v584_v54 = vmul.f32 %v552_v42, %v2433_v57  ;;  %v431_v44 = vpop.f32.mrf.mxu1 }
  0xcb   : > { %864 = vst [vmem:[#allocation2 + $0xb4] sm:$0xf] %v832_v45  ;;  %v840_v58 = vpack.c.bf16 %v758_v28, %v758_v28  ;;  %2039 = vtanh.f32 %v663_v48  ;;  %v528_v59 = vmul.f32 0.044715, %v2442_v29  ;;  %v2454_v60 = vadd.f32 %v2343_v49, %v466_v43 }
  0xcc   : > { %v735_v61 = vmul.f32 %v703_v52, %v479_v24  ;;  %2041 = vtanh.f32 %v640_v53  ;;  %v616_v46 = vadd.f32 %v584_v54, %v2433_v57  ;;  %v2458_v62 = vadd.f32 %v2343_v49, %v408_v50 }
  0xcd   : > { %v2036_v63 = vpop.eup %2035  ;;  %872 = vst [vmem:[#allocation2 + $0xf4] sm:$0xf] %v840_v58  ;;  %v495_v0 = vmul.f32 0.5, %v2411_v51  ;;  %v560_v1 = vmul.f32 %v528_v59, %v2442_v29  ;;  %v536_v3 = vmul.f32 0.044715, %v2454_v60  ;;  %v2464_v4 = vadd.f32 %v2343_v49, %v428_v37 }
  0xce   : > { %v817_v8 = vpack.c.bf16 %v735_v61, %v735_v61  ;;  %v711_v9 = vadd.f32 1.0, %v2036_v63  ;;  %v503_v10 = vmul.f32 0.5, %v2415_v55  ;;  %v648_v56 = vmul.f32 0.7978846, %v616_v46 }
  0xcf   : > { %v480_v12 = vmul.f32 0.5, %v2425_v11  ;;  %v592_v13 = vmul.f32 %v560_v1, %v2442_v29  ;;  %v568_v6 = vmul.f32 %v536_v3, %v2454_v60  ;;  %v513_v51 = vmul.f32 0.044715, %v2458_v62  ;;  %v451_v63 = vpop.f32.mrf.mxu2 }
  0xd0   : > { %v2038_v14 = vpop.eup %2037  ;;  %849 = vst [vmem:[#allocation2 + $0x38] sm:$0xf] %v817_v8  ;;  %v743_v15 = vmul.f32 %v711_v9, %v487_v47  ;;  %2043 = vtanh.f32 %v648_v56  ;;  %v521_v16 = vmul.f32 0.044715, %v2464_v4  ;;  %v2473_v17 = vadd.f32 %v2343_v49, %v448_v7 }
  0xd1   : > { %v2040_v18 = vpop.eup %2039  ;;  %v719_v55 = vadd.f32 1.0, %v2038_v14  ;;  %v624_v19 = vadd.f32 %v592_v13, %v2442_v29  ;;  %v600_v11 = vmul.f32 %v568_v6, %v2454_v60  ;;  %v545_v20 = vmul.f32 %v513_v51, %v2458_v62  ;;  %v413_v14 = vpop.f32.mrf.mxu0 }
  0xd2   : > { %v2042_v21 = vpop.eup %2041  ;;  %v825_v22 = vpack.c.bf16 %v743_v15, %v743_v15  ;;  %v727_v23 = vadd.f32 1.0, %v2040_v18  ;;  %v488_v24 = vmul.f32 0.5, %v2433_v57  ;;  %v553_v5 = vmul.f32 %v521_v16, %v2464_v4 }
  0xd3   : > { %v751_v26 = vmul.f32 %v719_v55, %v495_v0  ;;  %v704_v27 = vadd.f32 1.0, %v2042_v21  ;;  %v656_v30 = vmul.f32 0.7978846, %v624_v19  ;;  %v632_v31 = vadd.f32 %v600_v11, %v2454_v60 }
  0xd4   : > { %857 = vst [vmem:[#allocation2 + $0x78] sm:$0xf] %v825_v22  ;;  %v759_v33 = vmul.f32 %v727_v23, %v503_v10  ;;  %v577_v34 = vmul.f32 %v545_v20, %v2458_v62  ;;  %v585_v2 = vmul.f32 %v553_v5, %v2464_v4  ;;  %v529_v35 = vmul.f32 0.044715, %v2473_v17 }
  0xd5   : > { %v833_v36 = vpack.c.bf16 %v751_v26, %v751_v26  ;;  %v736_v38 = vmul.f32 %v704_v27, %v480_v12  ;;  %2045 = vtanh.f32 %v656_v30  ;;  %v664_v57 = vmul.f32 0.7978846, %v632_v31 }
  0xd6   : > { %v2044_v39 = vpop.eup %2043  ;;  %v841_v40 = vpack.c.bf16 %v759_v33, %v759_v33  ;;  %v609_v41 = vadd.f32 %v577_v34, %v2458_v62  ;;  %v617_v42 = vadd.f32 %v585_v2, %v2464_v4  ;;  %v561_v43 = vmul.f32 %v529_v35, %v2473_v17 }
  0xd7   : > { %865 = vst [vmem:[#allocation2 + $0xb8] sm:$0xf] %v833_v36  ;;  %v818_v45 = vpack.c.bf16 %v736_v38, %v736_v38  ;;  %v712_v28 = vadd.f32 1.0, %v2044_v39  ;;  %2047 = vtanh.f32 %v664_v57  ;;  %v2488_v47 = vadd.f32 %v2343_v49, %v468_v25  ;;  %v433_v36 = vpop.f32.mrf.mxu1 }
  0xd8   : > { %873 = vst [vmem:[#allocation2 + $0xf8] sm:$0xf] %v841_v40  ;;  %v641_v48 = vmul.f32 0.7978846, %v609_v41  ;;  %v649_v50 = vmul.f32 0.7978846, %v617_v42  ;;  %v593_v52 = vmul.f32 %v561_v43, %v2473_v17  ;;  %v2492_v53 = vadd.f32 %v2343_v49, %v411_v32  ;;  %v453_v41 = vpop.f32.mrf.mxu2 }
  0xd9   : > { %850 = vst [vmem:[#allocation2 + $0x44] sm:$0xf] %v818_v45  ;;  %v744_v54 = vmul.f32 %v712_v28, %v488_v24  ;;  %v537_v37 = vmul.f32 0.044715, %v2488_v47  ;;  %v2496_v58 = vadd.f32 %v2343_v49, %v431_v44  ;;  %v496_v59 = vmul.f32 0.5, %v2442_v29  ;;  %v471_v29 = vpop.f32.mrf.mxu3 }
  0xda   : > { %2049 = vtanh.f32 %v641_v48  ;;  %v625_v61 = vadd.f32 %v593_v52, %v2473_v17  ;;  %v514_v46 = vmul.f32 0.044715, %v2492_v53  ;;  %v504_v3 = vmul.f32 0.5, %v2454_v60 }
  0xdb   : > { %v2046_v0 = vpop.eup %2045  ;;  %v826_v1 = vpack.c.bf16 %v744_v54, %v744_v54  ;;  %2051 = vtanh.f32 %v649_v50  ;;  %v569_v7 = vmul.f32 %v537_v37, %v2488_v47  ;;  %v522_v56 = vmul.f32 0.044715, %v2496_v58 }
  0xdc   : > { %v720_v8 = vadd.f32 1.0, %v2046_v0  ;;  %v657_v9 = vmul.f32 0.7978846, %v625_v61  ;;  %v546_v10 = vmul.f32 %v514_v46, %v2492_v53  ;;  %v481_v13 = vmul.f32 0.5, %v2458_v62 }
  0xdd   : > { %v2048_v12 = vpop.eup %2047  ;;  %858 = vst [vmem:[#allocation2 + $0x84] sm:$0xf] %v826_v1  ;;  %v489_v6 = vmul.f32 0.5, %v2464_v4  ;;  %v601_v51 = vmul.f32 %v569_v7, %v2488_v47  ;;  %v2509_v60 = vadd.f32 %v2343_v49, %v451_v63  ;;  %v554_v19 = vmul.f32 %v522_v56, %v2496_v58 }
  0xde   : > { %v752_v15 = vmul.f32 %v720_v8, %v496_v59  ;;  %v728_v16 = vadd.f32 1.0, %v2048_v12  ;;  %2053 = vtanh.f32 %v657_v9  ;;  %v578_v18 = vmul.f32 %v546_v10, %v2492_v53 }
  0xdf   : > { %v633_v55 = vadd.f32 %v601_v51, %v2488_v47  ;;  %v530_v11 = vmul.f32 0.044715, %v2509_v60  ;;  %v2516_v62 = vadd.f32 %v2343_v49, %v471_v29  ;;  %v2520_v23 = vadd.f32 %v2343_v49, %v413_v14 }
  0xe0   : > { %v2050_v4 = vpop.eup %2049  ;;  %v834_v20 = vpack.c.bf16 %v752_v15, %v752_v15  ;;  %v760_v21 = vmul.f32 %v728_v16, %v504_v3  ;;  %v610_v22 = vadd.f32 %v578_v18, %v2492_v53  ;;  %v586_v26 = vmul.f32 %v554_v19, %v2496_v58 }
  0xe1   : > { %v2052_v24 = vpop.eup %2051  ;;  %v705_v5 = vadd.f32 1.0, %v2050_v4  ;;  %v665_v25 = vmul.f32 0.7978846, %v633_v55  ;;  %v562_v27 = vmul.f32 %v530_v11, %v2509_v60  ;;  %v497_v32 = vmul.f32 0.5, %v2473_v17  ;;  %v473_v0 = vpop.f32.mrf.mxu3 }
  0xe2   : > { %866 = vst [vmem:[#allocation2 + $0xc4] sm:$0xf] %v834_v20  ;;  %v842_v30 = vpack.c.bf16 %v760_v21, %v760_v21  ;;  %v713_v31 = vadd.f32 1.0, %v2052_v24  ;;  %v642_v33 = vmul.f32 0.7978846, %v610_v22  ;;  %v618_v2 = vadd.f32 %v586_v26, %v2496_v58 }
  0xe3   : > { %v737_v34 = vmul.f32 %v705_v5, %v481_v13  ;;  %2055 = vtanh.f32 %v665_v25  ;;  %v594_v35 = vmul.f32 %v562_v27, %v2509_v60  ;;  %v538_v39 = vmul.f32 0.044715, %v2516_v62 }
  0xe4   : > { %v2054_v38 = vpop.eup %2053  ;;  %874 = vst [vmem:[#allocation2 + $0x104] sm:$0xf] %v842_v30  ;;  %v745_v57 = vmul.f32 %v713_v31, %v489_v6  ;;  %2057 = vtanh.f32 %v642_v33  ;;  %v515_v40 = vmul.f32 0.044715, %v2520_v23  ;;  %v650_v17 = vmul.f32 0.7978846, %v618_v2 }
  0xe5   : > { %v819_v42 = vpack.c.bf16 %v737_v34, %v737_v34  ;;  %v721_v43 = vadd.f32 1.0, %v2054_v38  ;;  %v626_v44 = vadd.f32 %v594_v35, %v2509_v60  ;;  %v570_v28 = vmul.f32 %v538_v39, %v2516_v62 }
  0xe6   : > { %v827_v45 = vpack.c.bf16 %v745_v57, %v745_v57  ;;  %v547_v48 = vmul.f32 %v515_v40, %v2520_v23  ;;  %v2533_v50 = vadd.f32 %v2343_v49, %v433_v36  ;;  %2059 = vtanh.f32 %v650_v17 }
  0xe7   : > { %851 = vst [vmem:[#allocation2 + $0x48] sm:$0xf] %v819_v42  ;;  %v753_v52 = vmul.f32 %v721_v43, %v497_v32  ;;  %v658_v54 = vmul.f32 0.7978846, %v626_v44  ;;  %v2536_v37 = vadd.f32 %v2343_v49, %v453_v41  ;;  %v505_v59 = vmul.f32 0.5, %v2488_v47 }
  0xe8   : > { %859 = vst [vmem:[#allocation2 + $0x88] sm:$0xf] %v827_v45  ;;  %v602_v61 = vmul.f32 %v570_v28, %v2516_v62  ;;  %v579_v46 = vmul.f32 %v547_v48, %v2520_v23  ;;  %v523_v63 = vmul.f32 0.044715, %v2533_v50  ;;  %v482_v7 = vmul.f32 0.5, %v2492_v53 }
  0xe9   : > { %v2056_v1 = vpop.eup %2055  ;;  %v835_v3 = vpack.c.bf16 %v753_v52, %v753_v52  ;;  %2061 = vtanh.f32 %v658_v54  ;;  %v531_v8 = vmul.f32 0.044715, %v2536_v37  ;;  %v2549_v6 = vadd.f32 %v2343_v49, %v473_v0 }
  0xea   : > { %v2058_v9 = vpop.eup %2057  ;;  %v729_v10 = vadd.f32 1.0, %v2056_v1  ;;  %v634_v56 = vadd.f32 %v602_v61, %v2516_v62  ;;  %v611_v47 = vadd.f32 %v579_v46, %v2520_v23  ;;  %v555_v29 = vmul.f32 %v523_v63, %v2533_v50 }
  0xeb   : > { %867 = vst [vmem:[#allocation2 + $0xc8] sm:$0xf] %v835_v3  ;;  %v706_v12 = vadd.f32 1.0, %v2058_v9  ;;  %v563_v13 = vmul.f32 %v531_v8, %v2536_v37  ;;  %v2186_v16 = vmov 0   ;;  %v490_v19 = vmul.f32 0.5, %v2496_v58 }
  0xec   : > { %v761_v51 = vmul.f32 %v729_v10, %v505_v59  ;;  %v666_v53 = vmul.f32 0.7978846, %v634_v56  ;;  %v643_v14 = vmul.f32 0.7978846, %v611_v47  ;;  %v587_v15 = vmul.f32 %v555_v29, %v2533_v50  ;;  %764 = vst [vmem:[#allocation2] sm:$0xf] %v2186_v16  ;;  %v2060_v18 = vpop.eup %2059 }
  0xed   : > { %v738_v55 = vmul.f32 %v706_v12, %v482_v7  ;;  %v595_v11 = vmul.f32 %v563_v13, %v2536_v37  ;;  %v539_v4 = vmul.f32 0.044715, %v2549_v6  ;;  %765 = vst [vmem:[#allocation2 + $0x4] sm:$0xf] %v2186_v16  ;;  %v714_v20 = vadd.f32 1.0, %v2060_v18 }
  0xee   : > { %v843_v49 = vpack.c.bf16 %v761_v51, %v761_v51  ;;  %2063 = vtanh.f32 %v666_v53  ;;  %v619_v21 = vadd.f32 %v587_v15, %v2533_v50  ;;  %766 = vst [vmem:[#allocation2 + $0x8] sm:$0xf] %v2186_v16  ;;  %v498_v26 = vmul.f32 0.5, %v2509_v60 }
  0xef   : > { %v2062_v22 = vpop.eup %2061  ;;  %v820_v24 = vpack.c.bf16 %v738_v55, %v738_v55  ;;  %2065 = vtanh.f32 %v643_v14  ;;  %v627_v5 = vadd.f32 %v595_v11, %v2536_v37  ;;  %v571_v58 = vmul.f32 %v539_v4, %v2549_v6  ;;  %767 = vst [vmem:[#allocation2 + $0xc] sm:$0xf] %v2186_v16 }
  0xf0   : > { %875 = vst [vmem:[#allocation2 + $0x108] sm:$0xf] %v843_v49  ;;  %v746_v25 = vmul.f32 %v714_v20, %v490_v19  ;;  %v722_v27 = vadd.f32 1.0, %v2062_v22  ;;  %v651_v30 = vmul.f32 0.7978846, %v619_v21  ;;  %v506_v38 = vmul.f32 0.5, %v2516_v62 }
  0xf1   : > { %852 = vst [vmem:[#allocation2 + $0x54] sm:$0xf] %v820_v24  ;;  %v659_v31 = vmul.f32 0.7978846, %v627_v5  ;;  %v603_v32 = vmul.f32 %v571_v58, %v2549_v6  ;;  %v483_v40 = vmul.f32 0.5, %v2520_v23  ;;  %v491_v62 = vmul.f32 0.5, %v2533_v50 }
  0xf2   : > { %v828_v33 = vpack.c.bf16 %v746_v25, %v746_v25  ;;  %v754_v34 = vmul.f32 %v722_v27, %v498_v26  ;;  %2067 = vtanh.f32 %v651_v30  ;;  %768 = vst [vmem:[#allocation2 + $0x10] sm:$0xf] %v2186_v16  ;;  %v499_v52 = vmul.f32 0.5, %v2536_v37 }
  0xf3   : > { %2069 = vtanh.f32 %v659_v31  ;;  %v635_v2 = vadd.f32 %v603_v32, %v2549_v6  ;;  %769 = vst [vmem:[#allocation2 + $0x14] sm:$0xf] %v2186_v16  ;;  %v507_v50 = vmul.f32 0.5, %v2549_v6 }
  0xf4   : > { %v2064_v35 = vpop.eup %2063  ;;  %860 = vst [vmem:[#allocation2 + $0x94] sm:$0xf] %v828_v33  ;;  %v836_v36 = vpack.c.bf16 %v754_v34, %v754_v34 }
  0xf5   : > { %v2066_v60 = vpop.eup %2065  ;;  %v730_v57 = vadd.f32 1.0, %v2064_v35  ;;  %v667_v39 = vmul.f32 0.7978846, %v635_v2  ;;  %770 = vst [vmem:[#allocation2 + $0x18] sm:$0xf] %v2186_v16 }
  0xf6   : > { %868 = vst [vmem:[#allocation2 + $0xd4] sm:$0xf] %v836_v36  ;;  %v707_v41 = vadd.f32 1.0, %v2066_v60 }
  0xf7   : > { %v762_v42 = vmul.f32 %v730_v57, %v506_v38  ;;  %2071 = vtanh.f32 %v667_v39  ;;  %771 = vst [vmem:[#allocation2 + $0x1c] sm:$0xf] %v2186_v16 }
  0xf8   : > { %v2068_v43 = vpop.eup %2067  ;;  %v739_v17 = vmul.f32 %v707_v41, %v483_v40  ;;  %773 = vst [vmem:[#allocation2 + $0x120] sm:$0xf] %v2186_v16 }
  0xf9   : > { %v2070_v44 = vpop.eup %2069  ;;  %v844_v45 = vpack.c.bf16 %v762_v42, %v762_v42  ;;  %v715_v28 = vadd.f32 1.0, %v2068_v43  ;;  %774 = vst [vmem:[#allocation2 + $0x124] sm:$0xf] %v2186_v16 }
  0xfa   : > { %v821_v48 = vpack.c.bf16 %v739_v17, %v739_v17  ;;  %v723_v23 = vadd.f32 1.0, %v2070_v44  ;;  %775 = vst [vmem:[#allocation2 + $0x128] sm:$0xf] %v2186_v16 }
  0xfb   : > { %876 = vst [vmem:[#allocation2 + $0x114] sm:$0xf] %v844_v45  ;;  %v747_v54 = vmul.f32 %v715_v28, %v491_v62 }
  0xfc   : > { %853 = vst [vmem:[#allocation2 + $0x58] sm:$0xf] %v821_v48  ;;  %v755_v59 = vmul.f32 %v723_v23, %v499_v52 }
  0xfd   : > { %v2072_v61 = vpop.eup %2071  ;;  %v829_v46 = vpack.c.bf16 %v747_v54, %v747_v54  ;;  %776 = vst [vmem:[#allocation2 + $0x12c] sm:$0xf] %v2186_v16 }
  0xfe   : > { %v837_v63 = vpack.c.bf16 %v755_v59, %v755_v59  ;;  %v731_v0 = vadd.f32 1.0, %v2072_v61  ;;  %777 = vst [vmem:[#allocation2 + $0x130] sm:$0xf] %v2186_v16 }
  0xff   : > { %861 = vst [vmem:[#allocation2 + $0x98] sm:$0xf] %v829_v46 }
 0x100   : > { %869 = vst [vmem:[#allocation2 + $0xd8] sm:$0xf] %v837_v63  ;;  %v763_v37 = vmul.f32 %v731_v0, %v507_v50 }
 0x101   : > { %778 = vst [vmem:[#allocation2 + $0x134] sm:$0xf] %v2186_v16 }
 0x102   : > { %v845_v1 = vpack.c.bf16 %v763_v37, %v763_v37  ;;  %779 = vst [vmem:[#allocation2 + $0x138] sm:$0xf] %v2186_v16 }
 0x103   : > { %780 = vst [vmem:[#allocation2 + $0x13c] sm:$0xf] %v2186_v16 }
 0x104   : > { %877 = vst [vmem:[#allocation2 + $0x118] sm:$0xf] %v845_v1 }
 0x105   : > { %782 = vst [vmem:[#allocation2 + $0x20] sm:$0xf] %v2186_v16 }
 0x106   : > { %783 = vst [vmem:[#allocation2 + $0x30] sm:$0xf] %v2186_v16 }
 0x107   : > { %784 = vst [vmem:[#allocation2 + $0x40] sm:$0xf] %v2186_v16 }
 0x108   : > { %785 = vst [vmem:[#allocation2 + $0x50] sm:$0xf] %v2186_v16 }
 0x109   : > { %786 = vst [vmem:[#allocation2 + $0x60] sm:$0xf] %v2186_v16 }
 0x10a   : > { %787 = vst [vmem:[#allocation2 + $0x70] sm:$0xf] %v2186_v16 }
 0x10b   : > { %788 = vst [vmem:[#allocation2 + $0x80] sm:$0xf] %v2186_v16 }
 0x10c   : > { %789 = vst [vmem:[#allocation2 + $0x90] sm:$0xf] %v2186_v16 }
 0x10d   : > { %790 = vst [vmem:[#allocation2 + $0xa0] sm:$0xf] %v2186_v16 }
 0x10e   : > { %791 = vst [vmem:[#allocation2 + $0xb0] sm:$0xf] %v2186_v16 }
 0x10f   : > { %792 = vst [vmem:[#allocation2 + $0xc0] sm:$0xf] %v2186_v16 }
 0x110   : > { %793 = vst [vmem:[#allocation2 + $0xd0] sm:$0xf] %v2186_v16 }
 0x111   : > { %794 = vst [vmem:[#allocation2 + $0xe0] sm:$0xf] %v2186_v16 }
 0x112   : > { %795 = vst [vmem:[#allocation2 + $0xf0] sm:$0xf] %v2186_v16 }
 0x113   : > { %796 = vst [vmem:[#allocation2 + $0x100] sm:$0xf] %v2186_v16 }
 0x114   : > { %797 = vst [vmem:[#allocation2 + $0x110] sm:$0xf] %v2186_v16 }
 0x115   : > { %798 = vst [vmem:[#allocation2 + $0x2c] sm:$0xf] %v2186_v16 }
 0x116   : > { %799 = vst [vmem:[#allocation2 + $0x3c] sm:$0xf] %v2186_v16 }
 0x117   : > { %800 = vst [vmem:[#allocation2 + $0x4c] sm:$0xf] %v2186_v16 }
 0x118   : > { %801 = vst [vmem:[#allocation2 + $0x5c] sm:$0xf] %v2186_v16 }
 0x119   : > { %802 = vst [vmem:[#allocation2 + $0x6c] sm:$0xf] %v2186_v16 }
 0x11a   : > { %803 = vst [vmem:[#allocation2 + $0x7c] sm:$0xf] %v2186_v16 }
 0x11b   : > { %804 = vst [vmem:[#allocation2 + $0x8c] sm:$0xf] %v2186_v16 }
 0x11c   : > { %805 = vst [vmem:[#allocation2 + $0x9c] sm:$0xf] %v2186_v16 }
 0x11d   : > { %806 = vst [vmem:[#allocation2 + $0xac] sm:$0xf] %v2186_v16 }
 0x11e   : > { %807 = vst [vmem:[#allocation2 + $0xbc] sm:$0xf] %v2186_v16 }
 0x11f   : > { %808 = vst [vmem:[#allocation2 + $0xcc] sm:$0xf] %v2186_v16 }
 0x120   : > { %809 = vst [vmem:[#allocation2 + $0xdc] sm:$0xf] %v2186_v16 }
 0x121   : > { %810 = vst [vmem:[#allocation2 + $0xec] sm:$0xf] %v2186_v16 }
 0x122   : > { %811 = vst [vmem:[#allocation2 + $0xfc] sm:$0xf] %v2186_v16 }
 0x123   : > { %812 = vst [vmem:[#allocation2 + $0x10c] sm:$0xf] %v2186_v16 }
 0x124   : > { %813 = vst [vmem:[#allocation2 + $0x11c] sm:$0xf] %v2186_v16 }
 0x125 LB: >> { %s1750_s9 = sshll.u32 %s2180_s8, 3  ;;  %s2621_s14 = smov 0   ;;  %s2180_s8 = sphi %s2615_s8, %s883_s8  }
 0x126 LB: >>> { %s891_s15 = sadd.s32 %s2184_s14, %s1750_s9  ;;  %v2073_v9 = vld [vmem:[%s2961_s3] ss:$0 sm:$0xff]  ;;  %v2074_v10 = vld [vmem:[%s2961_s3 + $0x1] ss:$0 sm:$0xff]  ;;  %vm947_vm1 = vcmask 1046528   ;;  %vm965_vm2 = vcmask 1045504   ;;  %s2184_s14 = sphi %s2621_s14, %s890_s14  }
 0x127   : >>> { %s1851_s17 = sshll.u32 %s891_s15, 4  ;;  %vm984_vm3 = vcmask 1044480   ;;  %v2075_v22 = vld [vmem:[%s2961_s3 + $0x2] ss:$0 sm:$0xff]  ;;  %v2076_v26 = vld [vmem:[%s2961_s3 + $0x3] ss:$0 sm:$0xff] }
 0x128   : >>> { %s894_s18 = scalar_lea.vmem [#allocation2], %s1851_s17  ;;  %v2077_v36 = vld [vmem:[%s2961_s3 + $0x4] ss:$0 sm:$0xff]  ;;  %vm1004_vm4 = vcmask 1043456   ;;  %v2078_v54 = vld [vmem:[%s2961_s3 + $0x5] ss:$0 sm:$0xff] }
 0x129   : >>> { %s1777_s23 = sshll.u32 %s2184_s14, 4  ;;  %vm1390_vm5 = vcmask 1041408   ;;  %s890_s14 = sadd.s32 1, %s2184_s14  }
 0x12a   : >>> { %s1402_s15 = sshra.s32 %s1777_s23, 3  ;;  %p887_p11 = scmp.ge.s32.totalorder %s890_s14, 8  }
 0x12b   : >>> { %v1870_v3 = vld [vmem:[%s894_s18] sm:$0xff]   ;;  %v2629_v7 = vld [vmem:[%s894_s18 + $0x8] sm:$0xff]   ;;  %v2631_v8 = vld [vmem:[%s894_s18 + $0x10] sm:$0xff]   ;;  %s1778_s17 = sshll.u32 %s1402_s15, 2  ;;  %s1779_s9 = sshll.u32 (%p887_p11), %s2180_s8, 7 }
 0x12c   : >>> { %v1871_v56 = vunpack.c.l.bf16 %v1870_v3  ;;  %v1872_v47 = vunpack.c.h.bf16 %v1870_v3  ;;  %v1875_v29 = vunpack.c.l.bf16 %v2629_v7  ;;  %v1876_v12 = vunpack.c.h.bf16 %v2629_v7  ;;  %v2641_v13 = vld [vmem:[%s894_s18 + $0x18] sm:$0xff]   ;;  %v2643_v6 = vld [vmem:[%s894_s18 + $0x20] sm:$0xff]   ;;  %v2645_v51 = vld [vmem:[%s894_s18 + $0x28] sm:$0xff]   ;;  %s1405_s19 = scalar_lea.vmem [#allocation3], %s1778_s17  ;;  %s883_s8 = sadd.s32 (%p887_p11), 1, %s2180_s8  }
 0x12d   : >>> { %v1879_v53 = vunpack.c.l.bf16 %v2631_v8  ;;  %v2649_v14 = vunpack.c.h.bf16 %v2631_v8  ;;  %v2652_v15 = vunpack.c.l.bf16 %v2641_v13  ;;  %v1884_v16 = vunpack.c.h.bf16 %v2641_v13  ;;  %v2655_v18 = vld [vmem:[%s894_s18 + $0x30] sm:$0xff]   ;;  %v2657_v55 = vld [vmem:[%s894_s18 + $0x38] sm:$0xff]   ;;  %v2659_v19 = vld [vmem:[%s894_s18 + $0x40] sm:$0xff]   ;;  %p880_p12 = scmp.ge.s32.totalorder (%p887_p11), %s883_s8, 2  }
 0x12e   : >>> { %v1887_v11 = vunpack.c.l.bf16 %v2643_v6  ;;  %v2663_v4 = vunpack.c.h.bf16 %v2643_v6  ;;  %v2666_v49 = vunpack.c.l.bf16 %v2645_v51  ;;  %v1892_v20 = vunpack.c.h.bf16 %v2645_v51  ;;  %v2669_v21 = vld [vmem:[%s894_s18 + $0x48] sm:$0xff]   ;;  %v2079_v3 = vld [vmem:[%s2961_s3 + $0x6] ss:$0 sm:$0xff] }
 0x12f   : >>> { %v1895_v24 = vunpack.c.l.bf16 %v2655_v18  ;;  %v2676_v5 = vunpack.c.h.bf16 %v2655_v18  ;;  %v2679_v58 = vunpack.c.l.bf16 %v2657_v55  ;;  %v1900_v25 = vunpack.c.h.bf16 %v2657_v55  ;;  %v2096_v55 = vld [vmem:[%s2961_s3 + $0x17] ss:$0 sm:$0xff] }
 0x130   : >>> { %v1903_v27 = vunpack.c.l.bf16 %v2659_v19  ;;  %v2687_v30 = vunpack.c.h.bf16 %v2659_v19  ;;  %v2690_v31 = vunpack.c.l.bf16 %v2669_v21  ;;  %v1908_v32 = vunpack.c.h.bf16 %v2669_v21 }
 0x131   : >>> { %v936_v33 = vmul.f32 %v2073_v9, %v1871_v56  ;;  %v937_v34 = vmul.f32 %v2073_v9, %v1872_v47  ;;  %v938_v2 = vmul.f32 %v2073_v9, %v1875_v29  ;;  %v941_v35 = vmul.f32 %v2074_v10, %v1871_v56 }
 0x132   : >>> { %v942_v60 = vmul.f32 %v2074_v10, %v1872_v47  ;;  %v943_v38 = vmul.f32 %v2074_v10, %v1875_v29  ;;  %v961_v57 = vmul.f32 %v2075_v22, %v1872_v47  ;;  %v962_v39 = vmul.f32 %v2075_v22, %v1875_v29 }
 0x133   : >>> { %v948_v40 = vrot.slane %v941_v35, 1  ;;  %v978_v41 = vmul.f32 %v2076_v26, %v1872_v47  ;;  %v979_v42 = vmul.f32 %v2076_v26, %v1875_v29  ;;  %v980_v43 = vmul.f32 %v2076_v26, %v1876_v12 }
 0x134   : >>> { %v949_v17 = vrot.slane %v942_v60, 1  ;;  %v951_v44 = vrot.slane %v943_v38, 1  ;;  %v966_v45 = vrot.slane %v961_v57, 2  ;;  %v967_v62 = vrot.slane %v962_v39, 2 }
 0x135   : >>> { %v985_v28 = vrot.slane %v978_v41, 3  ;;  %v986_v48 = vrot.slane %v979_v42, 3  ;;  %v988_v52 = vrot.slane %v980_v43, 3  ;;  %v998_v23 = vmul.f32 %v2077_v36, %v1872_v47  ;;  %v2080_v47 = vld [vmem:[%s2961_s3 + $0x7] ss:$0 sm:$0xff] }
 0x136   : >>> { %v950_v59 = vsel %vm947_vm1, %v948_v40, %v949_v17  ;;  %v952_v61 = vsel %vm947_vm1, %v949_v17, %v951_v44  ;;  %v958_v46 = vadd.f32 %v951_v44, %v938_v2  ;;  %v968_v63 = vsel %vm965_vm2, %v966_v45, %v967_v62  ;;  %v2081_v2 = vld [vmem:[%s2961_s3 + $0x8] ss:$0 sm:$0xff] }
 0x137   : >>> { %v956_v50 = vadd.f32 %v950_v59, %v936_v33  ;;  %v957_v0 = vadd.f32 %v952_v61, %v937_v34  ;;  %v987_v37 = vsel %vm984_vm3, %v985_v28, %v986_v48  ;;  %v989_v1 = vsel %vm984_vm3, %v986_v48, %v988_v52 }
 0x138   : >>> { %v974_v7 = vadd.f32 %v967_v62, %v958_v46  ;;  %v999_v9 = vmul.f32 %v2077_v36, %v1875_v29  ;;  %v1000_v10 = vmul.f32 %v2077_v36, %v1876_v12  ;;  %v1005_v56 = vrot.slane %v998_v23, 4 }
 0x139   : >>> { %v972_v22 = vadd.f32 %v966_v45, %v956_v50  ;;  %v973_v26 = vadd.f32 %v968_v63, %v957_v0  ;;  %v1021_v33 = vmul.f32 %v2078_v54, %v1879_v53  ;;  %v1022_v34 = vmul.f32 %v2078_v54, %v2649_v14 }
 0x13a   : >>> { %v995_v35 = vadd.f32 %v989_v1, %v974_v7  ;;  %v1006_v60 = vrot.slane %v999_v9, 4  ;;  %v1008_v29 = vrot.slane %v1000_v10, 4  ;;  %v1023_v12 = vmul.f32 %v2078_v54, %v2652_v15  ;;  %v2083_v9 = vld [vmem:[%s2961_s3 + $0xa] ss:$0 sm:$0xff] }
 0x13b   : >>> { %v993_v36 = vadd.f32 %v985_v28, %v972_v22  ;;  %v994_v38 = vadd.f32 %v987_v37, %v973_v26  ;;  %v1029_v57 = vmul.f32 %v2079_v3, %v1879_v53  ;;  %v1030_v39 = vmul.f32 %v2079_v3, %v2649_v14  ;;  %v2082_v53 = vld [vmem:[%s2961_s3 + $0x9] ss:$0 sm:$0xff] }
 0x13c   : >>> { %v1007_v40 = vsel %vm1004_vm4, %v1005_v56, %v1006_v60  ;;  %v1009_v41 = vsel %vm1004_vm4, %v1006_v60, %v1008_v29  ;;  %v1031_v42 = vmul.f32 %v2079_v3, %v2652_v15  ;;  %v1048_v43 = vmul.f32 %v2080_v47, %v2649_v14  ;;  %v2084_v60 = vld [vmem:[%s2961_s3 + $0xb] ss:$0 sm:$0xff] }
 0x13d   : >>> { %v1013_v17 = vadd.f32 %v1005_v56, %v993_v36  ;;  %v1014_v44 = vadd.f32 %v1007_v40, %v994_v38  ;;  %v1015_v45 = vadd.f32 %v1009_v41, %v995_v35  ;;  %v1035_v62 = vrot.slane %v1029_v57, 1 }
 0x13e   : >>> { %v1036_v48 = vrot.slane %v1030_v39, 1  ;;  %v1038_v28 = vrot.slane %v1031_v42, 1  ;;  %v1049_v52 = vmul.f32 %v2080_v47, %v2652_v15  ;;  %v1052_v8 = vrot.slane %v1048_v43, 2 }
 0x13f   : >>> { %v1024_v23 = vadd.f32 %v1021_v33, %v1013_v17  ;;  %v1025_v54 = vadd.f32 %v1022_v34, %v1014_v44  ;;  %v1026_v59 = vadd.f32 %v1023_v12, %v1015_v45  ;;  %v1064_v61 = vmul.f32 %v2081_v2, %v2649_v14  ;;  %v2086_v45 = vld [vmem:[%s2961_s3 + $0xd] ss:$0 sm:$0xff] }
 0x140   : >>> { %v1037_v46 = vsel %vm947_vm1, %v1035_v62, %v1036_v48  ;;  %v1039_v63 = vsel %vm947_vm1, %v1036_v48, %v1038_v28  ;;  %v1053_v50 = vrot.slane %v1049_v52, 2  ;;  %v1065_v0 = vmul.f32 %v2081_v2, %v2652_v15 }
 0x141   : >>> { %v1043_v37 = vadd.f32 %v1037_v46, %v1024_v23  ;;  %v1044_v1 = vadd.f32 %v1039_v63, %v1025_v54  ;;  %v1045_v3 = vadd.f32 %v1038_v28, %v1026_v59  ;;  %v1066_v7 = vmul.f32 %v2081_v2, %v1884_v16  ;;  %v2087_v46 = vld [vmem:[%s2961_s3 + $0xe] ss:$0 sm:$0xff] }
 0x142   : >>> { %v1054_v10 = vsel %vm965_vm2, %v1052_v8, %v1053_v50  ;;  %v1070_v56 = vrot.slane %v1064_v61, 3  ;;  %v1071_v47 = vrot.slane %v1065_v0, 3  ;;  %v1083_v22 = vmul.f32 %v2082_v53, %v2649_v14  ;;  %v2085_v14 = vld [vmem:[%s2961_s3 + $0xc] ss:$0 sm:$0xff] }
 0x143   : >>> { %v1058_v26 = vadd.f32 %v1052_v8, %v1043_v37  ;;  %v1059_v33 = vadd.f32 %v1054_v10, %v1044_v1  ;;  %v1060_v34 = vadd.f32 %v1053_v50, %v1045_v3  ;;  %v1073_v35 = vrot.slane %v1066_v7, 3 }
 0x144   : >>> { %v1072_v2 = vsel %vm984_vm3, %v1070_v56, %v1071_v47  ;;  %v1084_v29 = vmul.f32 %v2082_v53, %v2652_v15  ;;  %v1085_v12 = vmul.f32 %v2082_v53, %v1884_v16  ;;  %v1089_v36 = vrot.slane %v1083_v22, 4 }
 0x145   : >>> { %v1074_v38 = vsel %vm984_vm3, %v1071_v47, %v1073_v35  ;;  %v1078_v57 = vadd.f32 %v1070_v56, %v1058_v26  ;;  %v1079_v39 = vadd.f32 %v1072_v2, %v1059_v33  ;;  %v1105_v40 = vmul.f32 %v2083_v9, %v1887_v11 }
 0x146   : >>> { %v1080_v41 = vadd.f32 %v1074_v38, %v1060_v34  ;;  %v1090_v42 = vrot.slane %v1084_v29, 4  ;;  %v1092_v43 = vrot.slane %v1085_v12, 4  ;;  %v1106_v15 = vmul.f32 %v2083_v9, %v2663_v4 }
 0x147   : >>> { %v1097_v17 = vadd.f32 %v1089_v36, %v1078_v57  ;;  %v1107_v13 = vmul.f32 %v2083_v9, %v2666_v49  ;;  %v1113_v16 = vmul.f32 %v2084_v60, %v1887_v11  ;;  %v1114_v44 = vmul.f32 %v2084_v60, %v2663_v4 }
 0x148   : >>> { %v1091_v62 = vsel %vm1004_vm4, %v1089_v36, %v1090_v42  ;;  %v1093_v48 = vsel %vm1004_vm4, %v1090_v42, %v1092_v43  ;;  %v1115_v28 = vmul.f32 %v2084_v60, %v2666_v49  ;;  %v1132_v52 = vmul.f32 %v2085_v14, %v2663_v4  ;;  %v2088_v60 = vld [vmem:[%s2961_s3 + $0xf] ss:$0 sm:$0xff] }
 0x149   : >>> { %v1098_v8 = vadd.f32 %v1091_v62, %v1079_v39  ;;  %v1099_v53 = vadd.f32 %v1093_v48, %v1080_v41  ;;  %v1108_v23 = vadd.f32 %v1105_v40, %v1097_v17  ;;  %v1119_v54 = vrot.slane %v1113_v16, 1  ;;  %v2090_v41 = vld [vmem:[%s2961_s3 + $0x11] ss:$0 sm:$0xff] }
 0x14a   : >>> { %v1120_v6 = vrot.slane %v1114_v44, 1  ;;  %v1122_v11 = vrot.slane %v1115_v28, 1  ;;  %v1133_v59 = vmul.f32 %v2085_v14, %v2666_v49  ;;  %v1136_v61 = vrot.slane %v1132_v52, 2  ;;  %v2089_v14 = vld [vmem:[%s2961_s3 + $0x10] ss:$0 sm:$0xff] }
 0x14b   : >>> { %v1109_v63 = vadd.f32 %v1106_v15, %v1098_v8  ;;  %v1110_v50 = vadd.f32 %v1107_v13, %v1099_v53  ;;  %v1148_v0 = vmul.f32 %v2086_v45, %v2663_v4  ;;  %v1149_v37 = vmul.f32 %v2086_v45, %v2666_v49  ;;  %v2091_v28 = vld [vmem:[%s2961_s3 + $0x12] ss:$0 sm:$0xff] }
 0x14c   : >>> { %v1121_v1 = vsel %vm947_vm1, %v1119_v54, %v1120_v6  ;;  %v1123_v3 = vsel %vm947_vm1, %v1120_v6, %v1122_v11  ;;  %v1137_v7 = vrot.slane %v1133_v59, 2  ;;  %v1150_v9 = vmul.f32 %v2086_v45, %v1892_v20 }
 0x14d   : >>> { %v1127_v10 = vadd.f32 %v1121_v1, %v1108_v23  ;;  %v1128_v56 = vadd.f32 %v1123_v3, %v1109_v63  ;;  %v1129_v47 = vadd.f32 %v1122_v11, %v1110_v50  ;;  %v1154_v22 = vrot.slane %v1148_v0, 3  ;;  %v2092_v63 = vld [vmem:[%s2961_s3 + $0x13] ss:$0 sm:$0xff] }
 0x14e   : >>> { %v1138_v26 = vsel %vm965_vm2, %v1136_v61, %v1137_v7  ;;  %v1155_v33 = vrot.slane %v1149_v37, 3  ;;  %v1157_v34 = vrot.slane %v1150_v9, 3  ;;  %v1167_v35 = vmul.f32 %v2087_v46, %v2663_v4 }
 0x14f   : >>> { %v1142_v2 = vadd.f32 %v1136_v61, %v1127_v10  ;;  %v1143_v29 = vadd.f32 %v1138_v26, %v1128_v56  ;;  %v1144_v12 = vadd.f32 %v1137_v7, %v1129_v47  ;;  %v1168_v36 = vmul.f32 %v2087_v46, %v2666_v49 }
 0x150   : >>> { %v1156_v38 = vsel %vm984_vm3, %v1154_v22, %v1155_v33  ;;  %v1158_v57 = vsel %vm984_vm3, %v1155_v33, %v1157_v34  ;;  %v1169_v39 = vmul.f32 %v2087_v46, %v1892_v20  ;;  %v1173_v40 = vrot.slane %v1167_v35, 4  ;;  %v2093_v33 = vld [vmem:[%s2961_s3 + $0x14] ss:$0 sm:$0xff] }
 0x151   : >>> { %v1162_v42 = vadd.f32 %v1154_v22, %v1142_v2  ;;  %v1163_v43 = vadd.f32 %v1156_v38, %v1143_v29  ;;  %v1164_v15 = vadd.f32 %v1158_v57, %v1144_v12  ;;  %v1174_v17 = vrot.slane %v1168_v36, 4  ;;  %v2094_v38 = vld [vmem:[%s2961_s3 + $0x15] ss:$0 sm:$0xff] }
 0x152   : >>> { %v1176_v13 = vrot.slane %v1169_v39, 4  ;;  %v1189_v16 = vmul.f32 %v2088_v60, %v1895_v24  ;;  %v1190_v44 = vmul.f32 %v2088_v60, %v2676_v5  ;;  %v1191_v45 = vmul.f32 %v2088_v60, %v2679_v58 }
 0x153   : >>> { %v1175_v51 = vsel %vm1004_vm4, %v1173_v40, %v1174_v17  ;;  %v1181_v20 = vadd.f32 %v1173_v40, %v1162_v42  ;;  %v1197_v62 = vmul.f32 %v2089_v14, %v1895_v24  ;;  %v1198_v48 = vmul.f32 %v2089_v14, %v2676_v5 }
 0x154   : >>> { %v1177_v52 = vsel %vm1004_vm4, %v1174_v17, %v1176_v13  ;;  %v1182_v8 = vadd.f32 %v1175_v51, %v1163_v43  ;;  %v1199_v53 = vmul.f32 %v2089_v14, %v2679_v58  ;;  %v1216_v23 = vmul.f32 %v2090_v41, %v2676_v5 }
 0x155   : >>> { %v1183_v54 = vadd.f32 %v1177_v52, %v1164_v15  ;;  %v1192_v6 = vadd.f32 %v1189_v16, %v1181_v20  ;;  %v1203_v11 = vrot.slane %v1197_v62, 1  ;;  %v1204_v59 = vrot.slane %v1198_v48, 1 }
 0x156   : >>> { %v1193_v61 = vadd.f32 %v1190_v44, %v1182_v8  ;;  %v1206_v18 = vrot.slane %v1199_v53, 1  ;;  %v1217_v24 = vmul.f32 %v2090_v41, %v2679_v58  ;;  %v1220_v46 = vrot.slane %v1216_v23, 2 }
 0x157   : >>> { %v1194_v50 = vadd.f32 %v1191_v45, %v1183_v54  ;;  %v1205_v0 = vsel %vm947_vm1, %v1203_v11, %v1204_v59  ;;  %v1232_v37 = vmul.f32 %v2091_v28, %v2676_v5  ;;  %v1233_v1 = vmul.f32 %v2091_v28, %v2679_v58 }
 0x158   : >>> { %v1207_v3 = vsel %vm947_vm1, %v1204_v59, %v1206_v18  ;;  %v1211_v7 = vadd.f32 %v1205_v0, %v1192_v6  ;;  %v1221_v9 = vrot.slane %v1217_v24, 2  ;;  %v1234_v10 = vmul.f32 %v2091_v28, %v1900_v25  ;;  %v2097_v6 = vld [vmem:[%s2961_s3 + $0x18] ss:$0 sm:$0xff] }
 0x159   : >>> { %v1212_v56 = vadd.f32 %v1207_v3, %v1193_v61  ;;  %v1213_v47 = vadd.f32 %v1206_v18, %v1194_v50  ;;  %v1238_v22 = vrot.slane %v1232_v37, 3  ;;  %v1239_v26 = vrot.slane %v1233_v1, 3 }
 0x15a   : >>> { %v1222_v34 = vsel %vm965_vm2, %v1220_v46, %v1221_v9  ;;  %v1226_v35 = vadd.f32 %v1220_v46, %v1211_v7  ;;  %v1241_v60 = vrot.slane %v1234_v10, 3  ;;  %v1251_v2 = vmul.f32 %v2092_v63, %v2676_v5  ;;  %v2095_v5 = vld [vmem:[%s2961_s3 + $0x16] ss:$0 sm:$0xff] }
 0x15b   : >>> { %v1227_v29 = vadd.f32 %v1222_v34, %v1212_v56  ;;  %v1228_v12 = vadd.f32 %v1221_v9, %v1213_v47  ;;  %v1240_v36 = vsel %vm984_vm3, %v1238_v22, %v1239_v26  ;;  %v1252_v14 = vmul.f32 %v2092_v63, %v2679_v58 }
 0x15c   : >>> { %v1242_v57 = vsel %vm984_vm3, %v1239_v26, %v1241_v60  ;;  %v1246_v39 = vadd.f32 %v1238_v22, %v1226_v35  ;;  %v1253_v40 = vmul.f32 %v2092_v63, %v1900_v25  ;;  %v1257_v41 = vrot.slane %v1251_v2, 4 }
 0x15d   : >>> { %v1247_v42 = vadd.f32 %v1240_v36, %v1227_v29  ;;  %v1248_v43 = vadd.f32 %v1242_v57, %v1228_v12  ;;  %v1258_v15 = vrot.slane %v1252_v14, 4  ;;  %v1273_v58 = vmul.f32 %v2093_v33, %v1903_v27 }
 0x15e   : >>> { %v1260_v17 = vrot.slane %v1253_v40, 4  ;;  %v1265_v13 = vadd.f32 %v1257_v41, %v1246_v39  ;;  %v1274_v16 = vmul.f32 %v2093_v33, %v2687_v30  ;;  %v1275_v44 = vmul.f32 %v2093_v33, %v2690_v31 }
 0x15f   : >>> { %v1259_v25 = vsel %vm1004_vm4, %v1257_v41, %v1258_v15  ;;  %v1281_v45 = vmul.f32 %v2094_v38, %v1903_v27  ;;  %v1282_v51 = vmul.f32 %v2094_v38, %v2687_v30  ;;  %v1283_v20 = vmul.f32 %v2094_v38, %v2690_v31 }
 0x160   : >>> { %v1261_v62 = vsel %vm1004_vm4, %v1258_v15, %v1260_v17  ;;  %v1266_v48 = vadd.f32 %v1259_v25, %v1247_v42  ;;  %v1276_v28 = vadd.f32 %v1273_v58, %v1265_v13  ;;  %v1300_v52 = vmul.f32 %v2095_v5, %v2687_v30 }
 0x161   : >>> { %v1267_v8 = vadd.f32 %v1261_v62, %v1248_v43  ;;  %v1287_v53 = vrot.slane %v1281_v45, 1  ;;  %v1288_v23 = vrot.slane %v1282_v51, 1  ;;  %v1290_v54 = vrot.slane %v1283_v20, 1 }
 0x162   : >>> { %v1277_v19 = vadd.f32 %v1274_v16, %v1266_v48  ;;  %v1301_v27 = vmul.f32 %v2095_v5, %v2690_v31  ;;  %v1304_v11 = vrot.slane %v1300_v52, 2  ;;  %v1316_v59 = vmul.f32 %v2096_v55, %v2687_v30 }
 0x163   : >>> { %v1278_v61 = vadd.f32 %v1275_v44, %v1267_v8  ;;  %v1289_v18 = vsel %vm947_vm1, %v1287_v53, %v1288_v23  ;;  %v1291_v24 = vsel %vm947_vm1, %v1288_v23, %v1290_v54  ;;  %v1317_v46 = vmul.f32 %v2096_v55, %v2690_v31 }
 0x164   : >>> { %v1295_v63 = vadd.f32 %v1289_v18, %v1276_v28  ;;  %v1296_v50 = vadd.f32 %v1291_v24, %v1277_v19  ;;  %v1305_v0 = vrot.slane %v1301_v27, 2  ;;  %v1318_v37 = vmul.f32 %v2096_v55, %v1908_v32 }
 0x165   : >>> { %v1297_v1 = vadd.f32 %v1290_v54, %v1278_v61  ;;  %v1322_v3 = vrot.slane %v1316_v59, 3  ;;  %v1323_v7 = vrot.slane %v1317_v46, 3  ;;  %v1335_v9 = vmul.f32 %v2097_v6, %v2687_v30  ;;  %v2098_v30 = vld [vmem:[%s2962_s4] ss:$0 sm:$0xff] }
 0x166   : >>> { %v1306_v10 = vsel %vm965_vm2, %v1304_v11, %v1305_v0  ;;  %v1310_v56 = vadd.f32 %v1304_v11, %v1295_v63  ;;  %v1325_v47 = vrot.slane %v1318_v37, 3  ;;  %v1336_v22 = vmul.f32 %v2097_v6, %v2690_v31 }
 0x167   : >>> { %v1311_v26 = vadd.f32 %v1306_v10, %v1296_v50  ;;  %v1312_v33 = vadd.f32 %v1305_v0, %v1297_v1  ;;  %v1324_v34 = vsel %vm984_vm3, %v1322_v3, %v1323_v7  ;;  %v1337_v35 = vmul.f32 %v2097_v6, %v1908_v32  ;;  %v1862_v10 = vld [vmem:[%s2963_s5 + $0x10] sm:$0xff] (%p887_p11) }
 0x168   : >>> { %v1326_v60 = vsel %vm984_vm3, %v1323_v7, %v1325_v47  ;;  %v1330_v2 = vadd.f32 %v1322_v3, %v1310_v56  ;;  %v1341_v29 = vrot.slane %v1335_v9, 4  ;;  %v1342_v12 = vrot.slane %v1336_v22, 4  ;;  %v1867_v3 = vld [vmem:[%s2963_s5 + $0x38] sm:$0xff] (%p887_p11)  ;;  %v1864_v7 = vld [vmem:[%s2963_s5 + $0x20] sm:$0xff] (%p887_p11)  ;;  %v1861_v56 = vld [vmem:[%s2963_s5 + $0x8] sm:$0xff] (%p887_p11) }
 0x169   : >>> { %v1331_v36 = vadd.f32 %v1324_v34, %v1311_v26  ;;  %v1332_v14 = vadd.f32 %v1326_v60, %v1312_v33  ;;  %v1344_v38 = vrot.slane %v1337_v35, 4  ;;  %1541 = vmatpush.bf16.msra.mxu0 (%p887_p11), %v1867_v3  ;;  %1926 = vmatpush.bf16.msra.mxu1 (%p887_p11), %v1867_v3  ;;  %v1863_v9 = vld [vmem:[%s2963_s5 + $0x18] sm:$0xff] (%p887_p11)  ;;  %v1860_v47 = vld [vmem:[%s2963_s5] sm:$0xff] (%p887_p11) }
 0x16a   : >>> { %v1343_v31 = vsel %vm1004_vm4, %v1341_v29, %v1342_v12  ;;  %v1349_v57 = vadd.f32 %v1341_v29, %v1330_v2  ;;  %1927 = vmatpush.bf16.msra.mxu2 (%p887_p11), %v1867_v3  ;;  %1928 = vmatpush.bf16.msra.mxu3 (%p887_p11), %v1867_v3 }
 0x16b   : >>> { %v1345_v39 = vsel %vm1004_vm4, %v1342_v12, %v1344_v38  ;;  %v1350_v40 = vadd.f32 %v1343_v31, %v1331_v36  ;;  %v2105_v12 = vld [vmem:[%s2964_s6] ss:$0 sm:$0xff] (%p887_p11) }
 0x16c   : >>> { %v1351_v21 = vadd.f32 %v1345_v39, %v1332_v14  ;;  %v1356_v32 = vadd.f32 %v2098_v30, %v1349_v57 }
 0x16d   : >>> { %v1357_v41 = vadd.f32 %v2098_v30, %v1350_v40 }
 0x16e   : >>> { %v1358_v5 = vadd.f32 %v2098_v30, %v1351_v21  ;;  %v1362_v42 = vmul.f32 0.044715, %v1356_v32  ;;  %v1359_v28 = vmul.f32 0.5, %v1356_v32 }
 0x16f   : >>> { %v1363_v43 = vmul.f32 0.044715, %v1357_v41  ;;  %v1360_v8 = vmul.f32 0.5, %v1357_v41 }
 0x170   : >>> { %v1364_v15 = vmul.f32 0.044715, %v1358_v5  ;;  %v1365_v58 = vmul.f32 %v1362_v42, %v1356_v32  ;;  %v1361_v23 = vmul.f32 0.5, %v1358_v5 }
 0x171   : >>> { %v1366_v17 = vmul.f32 %v1363_v43, %v1357_v41 }
 0x172   : >>> { %v1367_v13 = vmul.f32 %v1364_v15, %v1358_v5  ;;  %v1368_v16 = vmul.f32 %v1365_v58, %v1356_v32 }
 0x173   : >>> { %v1369_v44 = vmul.f32 %v1366_v17, %v1357_v41 }
 0x174   : >>> { %v1370_v55 = vmul.f32 %v1367_v13, %v1358_v5  ;;  %v1371_v25 = vadd.f32 %v1368_v16, %v1356_v32 }
 0x175   : >>> { %v1372_v45 = vadd.f32 %v1369_v44, %v1357_v41 }
 0x176   : >>> { %v1373_v51 = vadd.f32 %v1370_v55, %v1358_v5  ;;  %v1374_v20 = vmul.f32 0.7978846, %v1371_v25 }
 0x177   : >>> { %v1375_v62 = vmul.f32 0.7978846, %v1372_v45 }
 0x178   : >>> { %v1376_v48 = vmul.f32 0.7978846, %v1373_v51  ;;  %2099 = vtanh.f32 %v1374_v20 }
 0x179   : >>> { %2101 = vtanh.f32 %v1375_v62 }
 0x17a   : >>> { %2103 = vtanh.f32 %v1376_v48 }
 0x17e   : >>> { %v2100_v52 = vpop.eup %2099 }
 0x17f   : >>> { %v2102_v53 = vpop.eup %2101  ;;  %v1380_v54 = vadd.f32 1.0, %v2100_v52 }
 0x180   : >>> { %v2104_v6 = vpop.eup %2103  ;;  %v1381_v19 = vadd.f32 1.0, %v2102_v53 }
 0x181   : >>> { %v1382_v27 = vadd.f32 1.0, %v2104_v6  ;;  %v1383_v11 = vmul.f32 %v1380_v54, %v1359_v28 }
 0x182   : >>> { %v1384_v59 = vmul.f32 %v1381_v19, %v1360_v8 }
 0x183   : >>> { %v1385_v61 = vmul.f32 %v1382_v27, %v1361_v23  ;;  %v1391_v18 = vrot.slane %v1383_v11, 6 }
 0x184   : >>> { %v1392_v24 = vrot.slane %v1384_v59, 6 }
 0x185   : >>> { %v1394_v46 = vrot.slane %v1385_v61, 6 }
 0x186   : >>> { %v1393_v63 = vsel %vm1390_vm5, %v1391_v18, %v1392_v24 }
 0x187   : >>> { %v1395_v50 = vsel %vm1390_vm5, %v1392_v24, %v1394_v46  ;;  %v1398_v0 = vadd.f32 %v2663_v4, %v1393_v63  ;;  %v1866_v4 = vld [vmem:[%s2963_s5 + $0x30] sm:$0xff] (%p887_p11) }
 0x188   : >>> { %v1399_v37 = vadd.f32 %v2666_v49, %v1395_v50  ;;  %889 = sbr.rel (!%p887_p11) target bundleno = 294 (0x126), region = 106  ;;  %1542 = vmatpush.bf16.msra.mxu0 (%p887_p11), %v1866_v4  ;;  %1929 = vmatpush.bf16.msra.mxu1 (%p887_p11), %v1866_v4  ;;  %v1865_v49 = vld [vmem:[%s2963_s5 + $0x28] sm:$0xff] (%p887_p11) }
 0x189   : >> { %1930 = vmatpush.bf16.msra.mxu2 (%p887_p11), %v1866_v4  ;;  %1931 = vmatpush.bf16.msra.mxu3 (%p887_p11), %v1866_v4 }
 0x18a   : >>> { %v1912_v1 = vpack.c.bf16 %v1399_v37, %v1398_v0 }
 0x18c   : >>> { %1913 = vst [vmem:[%s1405_s19] sm:$0xff] %v1912_v1   ;;  %1543 = vmatpush.bf16.msra.mxu0 (%p887_p11), %v1865_v49  ;;  %1932 = vmatpush.bf16.msra.mxu1 (%p887_p11), %v1865_v49  ;;  %s2902_s19 = scalar_lea.vmem (%p887_p11), %s271_s29, %s1779_s9 [#allocation4] }
 0x18d   : >> { %1933 = vmatpush.bf16.msra.mxu2 %v1865_v49  ;;  %1934 = vmatpush.bf16.msra.mxu3 %v1865_v49  ;;  %s1868_s18 = sshll.u32 (%p880_p12), %s2250_s28, 8  ;;  %s1620_s23 = sshll.u32 (%p880_p12), %s271_s29, 4  ;;  %s1621_s23 = int_to_ptr.vmem [resolvable:$true] %s1620_s23 }
 0x18e   : > { %s1619_s22 = scalar_lea.hbm (%p880_p12), %s2965_s7, %s1868_s18  ;;  %s1608_s9 = scalar_lea.sflag (%p880_p12), [#allocation5], %s269_s13 }
 0x18f   : > { %s1622_s15 = sshll.u32 (%p880_p12), %s1619_s22, 4  ;;  %s1623_s15 = int_to_ptr.hbm [resolvable:$true] %s1622_s15 }
 0x190   : >> { %1544 = vmatpush.bf16.msra.mxu0 %v1864_v7  ;;  %1935 = vmatpush.bf16.msra.mxu1 %v1864_v7  ;;  %s2120_s14 = sshra.s32 (%p880_p12), %s1623_s15, 4  ;;  %s2121_s14 = int_to_ptr.hbm [resolvable:$true] %s2120_s14 }
 0x191   : >> { %1936 = vmatpush.bf16.msra.mxu2 %v1864_v7  ;;  %1937 = vmatpush.bf16.msra.mxu3 %v1864_v7  ;;  %s2122_s8 = scalar_lea.hbm (%p880_p12), %s2121_s14, 256  ;;  %p2127_p2 = scmp.lt.s32.totalorder (%p880_p12), %s2121_s14, %s2965_s7 }
 0x192   : > { %p2123_p13 = scmp.ne.s32.totalorder (%p880_p12), %s2121_s14, %s2122_s8 }
 0x193   : >> { %v1852_v22 = vld [vmem:[#allocation3] sm:$0xff]  ;;  %v1854_v26 = vld [vmem:[#allocation3 + $0x10] sm:$0xff]  ;;  %v1853_v35 = vld [vmem:[#allocation3 + $0x8] sm:$0xff] }
 0x194   : >> { %1545 = vmatpush.bf16.msra.mxu0 %v1863_v9  ;;  %1938 = vmatpush.bf16.msra.mxu1 %v1863_v9  ;;  %v1856_v33 = vld [vmem:[#allocation3 + $0x20] sm:$0xff]  ;;  %v1858_v34 = vld [vmem:[#allocation3 + $0x30] sm:$0xff]  ;;  %v1855_v60 = vld [vmem:[#allocation3 + $0x18] sm:$0xff]  ;;  %p2124_p0 = pnand (%p880_p12), %p2123_p13, %p2267_p5 }
 0x195   : >> { %1939 = vmatpush.bf16.msra.mxu2 %v1863_v9  ;;  %1940 = vmatpush.bf16.msra.mxu3 %v1863_v9  ;;  %v1857_v2 = vld [vmem:[#allocation3 + $0x28] sm:$0xff]  ;;  %v1859_v29 = vld [vmem:[#allocation3 + $0x38] sm:$0xff] }
 0x196   : > { %p2125_p1 = pneg (%p880_p12), %p2124_p0 }
 0x198   : >> { %1546 = vmatpush.bf16.msra.mxu0 %v1862_v10  ;;  %1941 = vmatpush.bf16.msra.mxu1 %v1862_v10 }
 0x199   : >> { %1942 = vmatpush.bf16.msra.mxu2 %v1862_v10  ;;  %1943 = vmatpush.bf16.msra.mxu3 %v1862_v10 }
 0x19c   : >> { %1547 = vmatpush.bf16.msra.mxu0 %v1861_v56  ;;  %1944 = vmatpush.bf16.msra.mxu1 %v1861_v56 }
 0x19d   : >> { %1945 = vmatpush.bf16.msra.mxu2 %v1861_v56  ;;  %1946 = vmatpush.bf16.msra.mxu3 %v1861_v56 }
 0x1a0   : >> { %1548 = vmatpush.bf16.msra.mxu0 %v1860_v47  ;;  %1947 = vmatpush.bf16.msra.mxu1 %v1860_v47 }
 0x1a1   : >> { %1948 = vmatpush.bf16.msra.mxu2 %v1860_v47  ;;  %1949 = vmatpush.bf16.msra.mxu3 %v1860_v47 }
 0x1a3   : >> { %1549 = vmatmul.bf16.vlgmr.msra.gmra.mxu0 %v1852_v22  ;;  %1559 = vmatmul.bf16.vlgmr.msra.gmra.mxu1 %v1854_v26 }
 0x1a4   : >> { %1569 = vmatmul.bf16.vlgmr.msra.gmra.mxu2 %v1856_v33  ;;  %1579 = vmatmul.bf16.vlgmr.msra.gmra.mxu3 %v1858_v34 }
 0x1b3   : >> { %1554 = vmatmul.bf16.gmra.mxu0 %v1853_v35  ;;  %1564 = vmatmul.bf16.gmra.mxu1 %v1855_v60 }
 0x1b4   : >> { %1574 = vmatmul.bf16.gmra.mxu2 %v1857_v2  ;;  %1584 = vmatmul.bf16.gmra.mxu3 %v1859_v29 }
 0x220   : >> { %v1550_v30 = vpop.f32.mrf.mxu0  ;;  %v1560_v36 = vpop.f32.mrf.mxu1 }
 0x221   : >> { %v1551_v14 = vadd.f32 %v2105_v12, %v1550_v30  ;;  %v1561_v38 = vadd.f32 %v2105_v12, %v1560_v36 }
 0x223   : >> { %1591 = vst [vmem:[%s2902_s19] sm:$0xff] %v1551_v14 }
 0x224   : >> { %1595 = vst [vmem:[%s2902_s19 + $0x20] sm:$0xff] %v1561_v38 }
 0x227   : >> { %v1570_v31 = vpop.f32.mrf.mxu2  ;;  %v1580_v57 = vpop.f32.mrf.mxu3 }
 0x228   : >> { %v1571_v39 = vadd.f32 %v2105_v12, %v1570_v31  ;;  %v1581_v40 = vadd.f32 %v2105_v12, %v1580_v57  ;;  %v1552_v21 = vpop.f32.mrf.mxu0  ;;  %v1562_v32 = vpop.f32.mrf.mxu1 }
 0x229   : >> { %v1553_v41 = vadd.f32 %v2105_v12, %v1552_v21  ;;  %v1563_v5 = vadd.f32 %v2105_v12, %v1562_v32 }
 0x22a   : >> { %1599 = vst [vmem:[%s2902_s19 + $0x40] sm:$0xff] %v1571_v39 }
 0x22b   : >> { %1603 = vst [vmem:[%s2902_s19 + $0x60] sm:$0xff] %v1581_v40 }
 0x22c   : >> { %1592 = vst [vmem:[%s2902_s19 + $0x8] sm:$0xff] %v1553_v41 }
 0x22d   : >> { %1596 = vst [vmem:[%s2902_s19 + $0x28] sm:$0xff] %v1563_v5 }
 0x22f   : >> { %v1572_v42 = vpop.f32.mrf.mxu2  ;;  %v1582_v43 = vpop.f32.mrf.mxu3 }
 0x230   : >> { %v1573_v15 = vadd.f32 %v2105_v12, %v1572_v42  ;;  %v1583_v58 = vadd.f32 %v2105_v12, %v1582_v43  ;;  %v1555_v17 = vpop.f32.mrf.mxu0  ;;  %v1565_v13 = vpop.f32.mrf.mxu1 }
 0x231   : >> { %v1556_v16 = vadd.f32 %v2105_v12, %v1555_v17  ;;  %v1566_v44 = vadd.f32 %v2105_v12, %v1565_v13 }
 0x232   : >> { %1600 = vst [vmem:[%s2902_s19 + $0x48] sm:$0xff] %v1573_v15 }
 0x233   : >> { %1604 = vst [vmem:[%s2902_s19 + $0x68] sm:$0xff] %v1583_v58 }
 0x234   : >> { %1593 = vst [vmem:[%s2902_s19 + $0x10] sm:$0xff] %v1556_v16 }
 0x235   : >> { %1597 = vst [vmem:[%s2902_s19 + $0x30] sm:$0xff] %v1566_v44 }
 0x237   : >> { %v1575_v55 = vpop.f32.mrf.mxu2  ;;  %v1585_v25 = vpop.f32.mrf.mxu3 }
 0x238   : >> { %v1576_v45 = vadd.f32 %v2105_v12, %v1575_v55  ;;  %v1586_v51 = vadd.f32 %v2105_v12, %v1585_v25  ;;  %v1557_v20 = vpop.f32.mrf.mxu0  ;;  %v1567_v62 = vpop.f32.mrf.mxu1 }
 0x239   : >> { %v1558_v48 = vadd.f32 %v2105_v12, %v1557_v20  ;;  %v1568_v28 = vadd.f32 %v2105_v12, %v1567_v62 }
 0x23a   : >> { %1601 = vst [vmem:[%s2902_s19 + $0x50] sm:$0xff] %v1576_v45 }
 0x23b   : >> { %1605 = vst [vmem:[%s2902_s19 + $0x70] sm:$0xff] %v1586_v51 }
 0x23c   : >> { %1594 = vst [vmem:[%s2902_s19 + $0x18] sm:$0xff] %v1558_v48 }
 0x23d   : >> { %1598 = vst [vmem:[%s2902_s19 + $0x38] sm:$0xff] %v1568_v28 }
 0x23f   : >> { %v1577_v52 = vpop.f32.mrf.mxu2  ;;  %v1587_v8 = vpop.f32.mrf.mxu3  ;;  %882 = sbr.rel (!%p880_p12) target bundleno = 293 (0x125), region = 117 }
 0x240   : >> { %v1578_v53 = vadd.f32 %v2105_v12, %v1577_v52  ;;  %v1588_v23 = vadd.f32 %v2105_v12, %v1587_v8 }
 0x242   : >> { %1602 = vst [vmem:[%s2902_s19 + $0x58] sm:$0xff] %v1578_v53 }
 0x243   : >> { %1606 = vst [vmem:[%s2902_s19 + $0x78] sm:$0xff] %v1588_v23  ;;  %s2126_s19 = scalar_lea.hbm (%p880_p12), %s2965_s7, 512 }
 0x244   : > { %p2128_p3 = scmp.lt.s32.totalorder %s2126_s19, %s2122_s8 }
 0x246   : > { %p2129_p4 = por %p2128_p3, %p2127_p2 }
 0x248   : > { %p2130_p7 = pnand %p2129_p4, %p2125_p1 }
 0x24a   : > { %2133 = shalt.err (!%p2130_p7)
}
 0x24b   : > { %s2187_s13 = smov 128   ;;  %s2188_s16 = smov 8  }
 0x24c   : > { %1950 = dma.vmem_to_hbm [thread:$0]  (%p2267_p5), %s1621_s23, 4096, %s1623_s15, %s1608_s9, %s2187_s13, %s2187_s13, %s2188_s16  }
 0x24d PF: > { %p1956_p8 = scmp.ge.s32.totalorder %s2176_s27, 2  ;;  %s1637_s29 = sand.u32 1, %s2164_s24  }
 0x24e   : > { %s1638_s21 = scalar_lea.sflag [#allocation5], %s1637_s29 }
 0x24f   : > { %p1953_p9 = pnand %p1956_p8, %p2271_p6 }
 0x251   : > { %p1954_p10 = pneg %p1953_p9 }
 0x253   : > { %2159 = dma.done.wait (%p1954_p10), %s1638_s21, 4096  }
 0x254   : > { %2161 = vsyncadd (%p1954_p10), %s1638_s21, 4294963200  ;;  %p17_p11 = scmp.ge.s32.totalorder %s2254_s30, 4   ;;  %s2968_s24 = smov %s2168_s25 }
 0x255   : > { %s2969_s25 = smov %s2172_s26  ;;  %s2970_s26 = smov %s2265_s10 }
 0x256   : > { %s2971_s27 = smov %s2254_s30  ;;  %19 = sbr.rel (!%p17_p11) target bundleno = 3 (0x3), region = 128 }
 0x25b   :  { %1644 = vsyncpa [#allocation5], 1 }
 0x25c   :  { %1646 = vsyncpa [#allocation5 + $0x1], 1 }

</bundles_post_ra>
